<compile_context>
chip_gen: v5e
topology: v5e:2x2
jax: 0.10.0
libtpu: 0.0.40
codegen_flags: <defaults>
</compile_context>

<pallas_src>
import functools

import jax
import jax.numpy as jnp
from jax.experimental import pallas as pl
from jax.experimental.pallas import tpu as pltpu

BERT_DIM = 768          # hardcoded in the PyTorch module (nn.Linear(768, hidden_dim))
HIDDEN_DIM = 32
OUTPUT_DIM = 8
OUT_PAD = 128           # lane-dense output width (multiple of 128 lanes)
NEG_SLOPE = 0.01        # nn.LeakyReLU() default negative_slope


def _round_up(x, m):
    return (x + m - 1) // m * m


def _cdiv(a, b):
    return (a + b - 1) // b


def _tpu_generation():
    """Best-effort TPU generation detection (pure Python, trace-time)."""
    try:
        kind = jax.devices()[0].device_kind.lower()
    except Exception:
        return "unknown"
    if "v5 lite" in kind or "v5lite" in kind or "v5e" in kind:
        return "v5e"
    if "v6" in kind:
        return "v6e"
    if "7x" in kind or "v7" in kind:
        return "v7x"
    return "unknown"


def _gen_config(gen):
    """Returns (tb_max, min_tiles, bf16_tanh, out_dtype, vmem_limit_bytes)."""
    if gen == "v6e":
        # Big tile to amortize per-step overhead; bf16 EUP tanh; bf16 writeback.
        return 2048, 1, True, jnp.bfloat16, 96 * 1024 * 1024
    if gen == "v7x":
        # Keep >= 2 grid steps so the batch axis shards across both TensorCores.
        return 1024, 2, True, jnp.float32, None
    # v5e / unknown: conservative (16 MiB scoped VMEM default, f32-only EUP).
    return 512, 1, False, jnp.float32, None


def _fused_kernel(mean_ref, pw_ref, pb_ref, w1_ref, b1_ref, w2_ref, b2_ref, o_ref,
                  *, bf16_tanh):
    """Fused (synthetic pooler) -> linear1 -> LeakyReLU -> linear2.

    mean_ref: [TB, 768]  bf16   (batch tile of mean-pooled embeddings, pipelined)
    pw_ref  : [768, 768] bf16   (synthetic pooler weight, VMEM-resident)
    pb_ref  : [1, 768]   f32
    w1_ref  : [768, 32]  bf16   (linear1 weight, pre-transposed)
    b1_ref  : [1, 32]    f32
    w2_ref  : [32, 128]  bf16   (linear2 weight, pre-transposed + zero-padded to 128)
    b2_ref  : [1, 128]   f32    (zero-padded)
    o_ref   : [TB, 128]  f32/bf16 (lane-dense; wrapper slices the real output_dim cols)
    """
    m = mean_ref[...]                                                   # bf16
    # Synthetic frozen-BERT pooler: tanh(mean @ Wp + bp).  MXU dot with f32 acc;
    # tanh on the EUP slot (bf16 tanh on v6e/v7x -> ~2x EUP rate; f32 on v5e).
    z = jnp.dot(m, pw_ref[...], preferred_element_type=jnp.float32) + pb_ref[...]
    if bf16_tanh:
        pooled = jnp.tanh(z.astype(jnp.bfloat16))                       # bf16 EUP
    else:
        pooled = jnp.tanh(z).astype(jnp.bfloat16)                       # f32 EUP
    # --- classifier head (matches the PyTorch module's forward) ---
    h = jnp.dot(pooled, w1_ref[...],
                preferred_element_type=jnp.float32) + b1_ref[...]
    h = jnp.where(h >= 0, h, NEG_SLOPE * h)                             # LeakyReLU (VPU)
    y = jnp.dot(h.astype(jnp.bfloat16), w2_ref[...],
                preferred_element_type=jnp.float32) + b2_ref[...]
    o_ref[...] = y.astype(o_ref.dtype)                                  # [TB, 128]


def prepare_params(pooler_w, pooler_b, w1, b1, w2, b2):
    """One-time prep for the FROZEN weights (hoisted out of the per-call path):
    transpose to [in, out], zero-pad W2/b2 to a lane-dense 128-wide output, and cast
    all matmul operands to bf16 (biases stay f32)."""
    hidden = w1.shape[0]
    out_dim = w2.shape[0]
    pw = pooler_w.astype(jnp.bfloat16)                                  # [768, 768]
    pb = pooler_b.reshape(1, BERT_DIM).astype(jnp.float32)              # [1, 768]
    w1_t = jnp.transpose(w1).astype(jnp.bfloat16)                       # [768, hidden]
    b1_2d = b1.reshape(1, hidden).astype(jnp.float32)                   # [1, hidden]
    w2_t = jnp.transpose(w2).astype(jnp.float32)                        # [hidden, out]
    w2_pad = jnp.zeros((hidden, OUT_PAD), jnp.float32)
    w2_pad = w2_pad.at[:, :out_dim].set(w2_t).astype(jnp.bfloat16)      # [hidden, 128]
    b2_pad = jnp.zeros((1, OUT_PAD), jnp.float32).at[0, :out_dim].set(
        b2.astype(jnp.float32))                                         # [1, 128]
    return (pw, pb, w1_t, b1_2d, w2_pad, b2_pad), out_dim


def bert_linear_freeze_forward(mean_emb, params, out_dim):
    """mean_emb: [B, 768] (ideally already bf16) mean-pooled embeddings.
    Returns [B, out_dim]."""
    pw, pb, w1_t, b1_2d, w2_pad, b2_pad = params
    B = mean_emb.shape[0]
    hidden = w1_t.shape[1]

    gen = _tpu_generation()
    tb_max, min_tiles, bf16_tanh, out_dtype, vmem_limit = _gen_config(gen)

    # Per-call tile choice: n_tiles grid steps, tile rounded to 8 sublanes, so the
    # number of dead (padded) rows per call is < 8 * n_tiles instead of up to tb-1.
    n_tiles = max(min_tiles, _cdiv(B, tb_max))
    tb = _round_up(_cdiv(B, n_tiles), 8)
    b_pad = n_tiles * tb

    # No standalone cast pass: upstream (mean_pooled_embeddings) already emits bf16.
    x = mean_emb if mean_emb.dtype == jnp.bfloat16 else mean_emb.astype(jnp.bfloat16)
    if b_pad != B:
        x = jnp.pad(x, ((0, b_pad - B), (0, 0)))

    out_bytes = 2 if out_dtype == jnp.bfloat16 else 4
    cost = pl.CostEstimate(
        flops=2 * b_pad * BERT_DIM * (BERT_DIM + hidden) + 2 * b_pad * hidden * OUT_PAD,
        transcendentals=b_pad * BERT_DIM,
        bytes_accessed=(b_pad * BERT_DIM * 2                       # x tile (bf16)
                        + b_pad * OUT_PAD * out_bytes              # output writeback
                        + BERT_DIM * BERT_DIM * 2                  # pooler W (bf16)
                        + BERT_DIM * hidden * 2 + hidden * OUT_PAD * 2
                        + (BERT_DIM + hidden + OUT_PAD) * 4),      # biases (f32)
    )

    # Constant-index (weight/bias) inputs: single-buffered, they are never re-fetched.
    resident = dict(pipeline_mode=pl.Buffered(1))

    compiler_kwargs = dict(dimension_semantics=("parallel",))  # shard batch across TCs
    if vmem_limit is not None and tb >= 1024:
        compiler_kwargs["vmem_limit_bytes"] = vmem_limit

    out = pl.pallas_call(
        functools.partial(_fused_kernel, bf16_tanh=bf16_tanh),
        out_shape=jax.ShapeDtypeStruct((b_pad, OUT_PAD), out_dtype),
        grid=(n_tiles,),
        in_specs=[
            pl.BlockSpec((tb, BERT_DIM), lambda i: (i, 0)),                   # x tile
            pl.BlockSpec((BERT_DIM, BERT_DIM), lambda i: (0, 0), **resident),  # pooler W
            pl.BlockSpec((1, BERT_DIM), lambda i: (0, 0), **resident),         # pooler b
            pl.BlockSpec((BERT_DIM, hidden), lambda i: (0, 0), **resident),    # W1
            pl.BlockSpec((1, hidden), lambda i: (0, 0), **resident),           # b1
            pl.BlockSpec((hidden, OUT_PAD), lambda i: (0, 0), **resident),     # W2 pad
            pl.BlockSpec((1, OUT_PAD), lambda i: (0, 0), **resident),          # b2 pad
        ],
        out_specs=pl.BlockSpec((tb, OUT_PAD), lambda i: (i, 0)),
        compiler_params=pltpu.CompilerParams(**compiler_kwargs),
        cost_estimate=cost,
    )(x, pw, pb, w1_t, b1_2d, w2_pad, b2_pad)

    return out[:B, :out_dim]


def mean_pooled_embeddings(input_ids, emb_table):
    """Plain-JAX glue (irregular gather): embedding lookup + mean pool over sequence.
    Emits bf16 directly so no separate cast pass over HBM is needed before the kernel."""
    emb = emb_table[input_ids]                        # [B, S, 768]
    return jnp.mean(emb, axis=1).astype(jnp.bfloat16)  # [B, 768] bf16 (cast fuses)


if __name__ == "__main__":
    key = jax.random.PRNGKey(0)
    k_emb, k_pw, k_pb, k_w1, k_b1, k_w2, k_b2, k_ids = jax.random.split(key, 8)

    batch = 2
    seq = 8
    vocab = 100

    # Synthetic "frozen BERT" parameters (deterministic stand-in, see TODO above).
    emb_table = jax.random.normal(k_emb, (vocab, BERT_DIM), jnp.float32) * 0.02
    pooler_w = jax.random.normal(k_pw, (BERT_DIM, BERT_DIM), jnp.float32) * 0.02
    pooler_b = jax.random.normal(k_pb, (BERT_DIM,), jnp.float32) * 0.02

    # Classifier head parameters (PyTorch nn.Linear convention: [out, in]).
    w1 = jax.random.normal(k_w1, (HIDDEN_DIM, BERT_DIM), jnp.float32) * 0.05
    b1 = jax.random.normal(k_b1, (HIDDEN_DIM,), jnp.float32) * 0.05
    w2 = jax.random.normal(k_w2, (OUTPUT_DIM, HIDDEN_DIM), jnp.float32) * 0.05
    b2 = jax.random.normal(k_b2, (OUTPUT_DIM,), jnp.float32) * 0.05

    input_ids = jax.random.randint(k_ids, (batch, seq), 0, vocab, dtype=jnp.int32)

    # One-time weight prep (frozen weights -> transposed / padded / bf16).
    params, out_dim = prepare_params(pooler_w, pooler_b, w1, b1, w2, b2)
    params = jax.tree_util.tree_map(jax.block_until_ready, params)

    mean_emb = mean_pooled_embeddings(input_ids, emb_table)   # bf16 [B, 768]

    fwd = jax.jit(bert_linear_freeze_forward, static_argnums=(2,))
    out = fwd(mean_emb, params, out_dim)
    out = jax.block_until_ready(out)

    # Pure-f32 JAX reference of the fused chain (pooler + head), starting from the
    # same bf16-rounded mean-pooled input the kernel consumes.  bf16 matmul operands
    # with f32 accumulation give ~1% relative error -> loose-ish tolerance.
    mean_f32 = mean_emb.astype(jnp.float32)
    pooled_ref = jnp.tanh(mean_f32 @ pooler_w + pooler_b)
    ref_h = pooled_ref @ w1.T + b1
    ref_h = jnp.where(ref_h >= 0, ref_h, NEG_SLOPE * ref_h)
    ref = ref_h @ w2.T + b2

    out_f32 = out.astype(jnp.float32)
    assert out.shape == (batch, OUTPUT_DIM)
    assert jnp.all(jnp.isfinite(out_f32))
    assert jnp.allclose(out_f32, ref, atol=2e-2, rtol=2e-2)

    print("KERNEL_OK")
</pallas_src>

<mosaic_0001>
module attributes {stable_mosaic.version = 11 : i64} {
  func.func @_fused_kernel(%arg0: i32, %arg1: memref<8x768xbf16, #tpu.memory_space<vmem>>, %arg2: memref<768x768xbf16, #tpu.memory_space<vmem>>, %arg3: memref<1x768xf32, #tpu.memory_space<vmem>>, %arg4: memref<768x32xbf16, #tpu.memory_space<vmem>>, %arg5: memref<1x32xf32, #tpu.memory_space<vmem>>, %arg6: memref<32x128xbf16, #tpu.memory_space<vmem>>, %arg7: memref<1x128xf32, #tpu.memory_space<vmem>>, %arg8: memref<8x128xf32, #tpu.memory_space<vmem>>) attributes {dimension_semantics = [#tpu.dimension_semantics<parallel>], iteration_bounds = array<i64: 1>, scalar_prefetch = 0 : i64, scratch_operands = 0 : i64, tpu.core_type = #tpu.core_type<tc>, window_params = [{transform_indices = @transform_0, window_bounds = array<i64: 8, 768>}, {pipeline_mode = #tpu.pipeline_mode<synchronous>, transform_indices = @transform_1, window_bounds = array<i64: 768, 768>}, {pipeline_mode = #tpu.pipeline_mode<synchronous>, transform_indices = @transform_2, window_bounds = array<i64: 1, 768>}, {pipeline_mode = #tpu.pipeline_mode<synchronous>, transform_indices = @transform_3, window_bounds = array<i64: 768, 32>}, {pipeline_mode = #tpu.pipeline_mode<synchronous>, transform_indices = @transform_4, window_bounds = array<i64: 1, 32>}, {pipeline_mode = #tpu.pipeline_mode<synchronous>, transform_indices = @transform_5, window_bounds = array<i64: 32, 128>}, {pipeline_mode = #tpu.pipeline_mode<synchronous>, transform_indices = @transform_6, window_bounds = array<i64: 1, 128>}, {transform_indices = @transform_7, window_bounds = array<i64: 8, 128>}]} {
    %c0 = arith.constant 0 : index
    %c0_0 = arith.constant 0 : index
    %0 = vector.load %arg1[%c0, %c0_0] : memref<8x768xbf16, #tpu.memory_space<vmem>>, vector<8x768xbf16>
    %c0_1 = arith.constant 0 : index
    %c0_2 = arith.constant 0 : index
    %1 = vector.load %arg2[%c0_1, %c0_2] : memref<768x768xbf16, #tpu.memory_space<vmem>>, vector<768x768xbf16>
    %cst = arith.constant dense<0.000000e+00> : vector<8x768xf32>
    %2 = tpu.matmul %0, %1, %cst {dimension_numbers = #tpu.dot_dimension_numbers<[1], [0], [0], [1], [0, 0, 1, 1], [], []>} : vector<8x768xbf16>, vector<768x768xbf16>, vector<8x768xf32> -> vector<8x768xf32>
    %c0_3 = arith.constant 0 : index
    %c0_4 = arith.constant 0 : index
    %3 = vector.load %arg3[%c0_3, %c0_4] : memref<1x768xf32, #tpu.memory_space<vmem>>, vector<1x768xf32>
    %4 = vector.broadcast %3 : vector<1x768xf32> to vector<8x768xf32>
    %5 = arith.addf %2, %4 : vector<8x768xf32>
    %6 = math.tanh %5 : vector<8x768xf32>
    %7 = arith.truncf %6 : vector<8x768xf32> to vector<8x768xbf16>
    %c0_5 = arith.constant 0 : index
    %c0_6 = arith.constant 0 : index
    %8 = vector.load %arg4[%c0_5, %c0_6] : memref<768x32xbf16, #tpu.memory_space<vmem>>, vector<768x32xbf16>
    %cst_7 = arith.constant dense<0.000000e+00> : vector<8x32xf32>
    %9 = tpu.matmul %7, %8, %cst_7 {dimension_numbers = #tpu.dot_dimension_numbers<[1], [0], [0], [1], [0, 0, 1, 1], [], []>} : vector<8x768xbf16>, vector<768x32xbf16>, vector<8x32xf32> -> vector<8x32xf32>
    %c0_8 = arith.constant 0 : index
    %c0_9 = arith.constant 0 : index
    %10 = vector.load %arg5[%c0_8, %c0_9] : memref<1x32xf32, #tpu.memory_space<vmem>>, vector<1x32xf32>
    %11 = vector.broadcast %10 : vector<1x32xf32> to vector<8x32xf32>
    %12 = arith.addf %9, %11 : vector<8x32xf32>
    %cst_10 = arith.constant 0.000000e+00 : f32
    %13 = vector.broadcast %cst_10 : f32 to vector<8x32xf32>
    %14 = arith.cmpf oge, %12, %13 : vector<8x32xf32>
    %cst_11 = arith.constant 0.00999999977 : f32
    %15 = vector.broadcast %cst_11 : f32 to vector<8x32xf32>
    %16 = arith.mulf %15, %12 : vector<8x32xf32>
    %17 = arith.select %14, %12, %16 : vector<8x32xi1>, vector<8x32xf32>
    %18 = arith.truncf %17 : vector<8x32xf32> to vector<8x32xbf16>
    %c0_12 = arith.constant 0 : index
    %c0_13 = arith.constant 0 : index
    %19 = vector.load %arg6[%c0_12, %c0_13] : memref<32x128xbf16, #tpu.memory_space<vmem>>, vector<32x128xbf16>
    %cst_14 = arith.constant dense<0.000000e+00> : vector<8x128xf32>
    %20 = tpu.matmul %18, %19, %cst_14 {dimension_numbers = #tpu.dot_dimension_numbers<[1], [0], [0], [1], [0, 0, 1, 1], [], []>} : vector<8x32xbf16>, vector<32x128xbf16>, vector<8x128xf32> -> vector<8x128xf32>
    %c0_15 = arith.constant 0 : index
    %c0_16 = arith.constant 0 : index
    %21 = vector.load %arg7[%c0_15, %c0_16] : memref<1x128xf32, #tpu.memory_space<vmem>>, vector<1x128xf32>
    %22 = vector.broadcast %21 : vector<1x128xf32> to vector<8x128xf32>
    %23 = arith.addf %20, %22 : vector<8x128xf32>
    %c0_17 = arith.constant 0 : index
    %c0_18 = arith.constant 0 : index
    %24 = vector.load %arg8[%c0_17, %c0_18] : memref<8x128xf32, #tpu.memory_space<vmem>>, vector<8x128xf32>
    tpu.vector_store %arg8[%c0_17, %c0_18], %23 {strides = array<i32>} : memref<8x128xf32, #tpu.memory_space<vmem>>, vector<8x128xf32>,
    return
  }
  func.func @transform_0(%arg0: i32) -> (i32, i32) {
    %c0_i32 = arith.constant 0 : i32
    %c0_i32_0 = arith.constant 0 : i32
    return %arg0, %c0_i32 : i32, i32
  }
  func.func @transform_1(%arg0: i32) -> (i32, i32) {
    %c0_i32 = arith.constant 0 : i32
    %c0_i32_0 = arith.constant 0 : i32
    %c0_i32_1 = arith.constant 0 : i32
    return %c0_i32, %c0_i32_0 : i32, i32
  }
  func.func @transform_2(%arg0: i32) -> (i32, i32) {
    %c0_i32 = arith.constant 0 : i32
    %c0_i32_0 = arith.constant 0 : i32
    %c0_i32_1 = arith.constant 0 : i32
    return %c0_i32, %c0_i32_0 : i32, i32
  }
  func.func @transform_3(%arg0: i32) -> (i32, i32) {
    %c0_i32 = arith.constant 0 : i32
    %c0_i32_0 = arith.constant 0 : i32
    %c0_i32_1 = arith.constant 0 : i32
    return %c0_i32, %c0_i32_0 : i32, i32
  }
  func.func @transform_4(%arg0: i32) -> (i32, i32) {
    %c0_i32 = arith.constant 0 : i32
    %c0_i32_0 = arith.constant 0 : i32
    %c0_i32_1 = arith.constant 0 : i32
    return %c0_i32, %c0_i32_0 : i32, i32
  }
  func.func @transform_5(%arg0: i32) -> (i32, i32) {
    %c0_i32 = arith.constant 0 : i32
    %c0_i32_0 = arith.constant 0 : i32
    %c0_i32_1 = arith.constant 0 : i32
    return %c0_i32, %c0_i32_0 : i32, i32
  }
  func.func @transform_6(%arg0: i32) -> (i32, i32) {
    %c0_i32 = arith.constant 0 : i32
    %c0_i32_0 = arith.constant 0 : i32
    %c0_i32_1 = arith.constant 0 : i32
    return %c0_i32, %c0_i32_0 : i32, i32
  }
  func.func @transform_7(%arg0: i32) -> (i32, i32) {
    %c0_i32 = arith.constant 0 : i32
    %c0_i32_0 = arith.constant 0 : i32
    return %arg0, %c0_i32 : i32, i32
  }
}

</mosaic_0001>

<bundles_post_ra>
// kernel: bert_linear_freeze_forward.1
= control target key start
LH: loop header
LB: loop body
LE: loop exit
PB: predicated region body
PF: predicated region fallthrough
CT: control target
= control target key end

     0   :  { %12 = vsyncpa [#allocation3], 0  ;;  %s5003_s0 = inlined_call_operand.vmem [shape: bf16[8,768], index: 0, kind: input, shape index: {}]   ;;  %s5004_s1 = inlined_call_operand.hbm [shape: bf16[768,768], index: 1, kind: input, shape index: {}]   ;;  %s5005_s2 = inlined_call_operand.hbm [shape: f32[1,768], index: 2, kind: input, shape index: {}]   ;;  %s5006_s3 = inlined_call_operand.vmem [shape: bf16[768,32], index: 3, kind: input, shape index: {}]   ;;  %s5007_s4 = inlined_call_operand.hbm [shape: f32[1,32], index: 4, kind: input, shape index: {}]   ;;  %s5008_s5 = inlined_call_operand.hbm [shape: bf16[32,128], index: 5, kind: input, shape index: {}]   ;;  %s5009_s6 = inlined_call_operand.hbm [shape: f32[1,128], index: 6, kind: input, shape index: {}]   ;;  %s5010_s7 = inlined_call_operand.vmem [shape: f32[8,128], index: 7, kind: output, shape index: {}]  }
   0x1   :  { %13 = vsyncpa [#allocation5], 0  ;;  %s35_s26 = sshll.u32 %s5005_s2, 4  ;;  %s36_s26 = int_to_ptr.hbm [resolvable:$true] %s35_s26 }
   0x2   :  { %14 = vsyncpa [#allocation8], 0  ;;  %s4701_s27 = smov [#allocation4]   ;;  %s58_s8 = sshll.u32 %s5008_s5, 4  ;;  %s59_s8 = int_to_ptr.hbm [resolvable:$true] %s58_s8 }
   0x3   :  { %s37_s28 = sshll.u32 %s4701_s27, 4  ;;  %s4702_s9 = smov [#allocation7]   ;;  %s38_s28 = int_to_ptr.vmem [resolvable:$true] %s37_s28 }
   0x4   :  { %40 = dma.hbm_to_vmem [thread:$0]  %s36_s26, 96, %s38_s28, [#allocation5]  }
   0x5   :  { %s60_s10 = sshll.u32 %s4702_s9, 4  ;;  %s4703_s11 = smov 64   ;;  %s61_s10 = int_to_ptr.vmem [resolvable:$true] %s60_s10 }
   0x6   :  { %s4704_s12 = smov 4   ;;  %s21_s2 = sshll.u32 %s5004_s1, 4  ;;  %s22_s2 = int_to_ptr.hbm [resolvable:$true] %s21_s2 }
   0x7   :  { %66 = dma.hbm_to_vmem [thread:$0]  %s59_s8, 256, %s61_s10, [#allocation8], %s4703_s11, %s4703_s11, %s4704_s12  }
   0x8   :  { %s4705_s15 = smov [#allocation2]   ;;  %s48_s5 = sshll.u32 %s5007_s4, 4  ;;  %s49_s5 = int_to_ptr.hbm [resolvable:$true] %s48_s5 }
   0x9   :  { %s23_s16 = sshll.u32 %s4705_s15, 4  ;;  %s4706_s19 = smov 384   ;;  %s24_s16 = int_to_ptr.vmem [resolvable:$true] %s23_s16 }
   0xa   :  { %s4707_s20 = smov 24   ;;  %s4708_s21 = smov [#allocation6]  }
   0xb   :  { %29 = dma.hbm_to_vmem [thread:$0]  %s22_s2, 36864, %s24_s16, [#allocation3], %s4706_s19, %s4706_s19, %s4707_s20  }
   0xc   :  { %s50_s22 = sshll.u32 %s4708_s21, 4  ;;  %s72_s25 = sshll.u32 %s5009_s6, 4  ;;  %s51_s22 = int_to_ptr.vmem [resolvable:$true] %s50_s22  ;;  %s73_s25 = int_to_ptr.hbm [resolvable:$true] %s72_s25 }
   0xd   :  { %53 = dma.hbm_to_vmem [thread:$0]  %s49_s5, 16, %s51_s22, [#allocation5]  }
   0xe   :  { %s4709_s1 = smov [#allocation9]  }
   0xf   :  { %s74_s26 = sshll.u32 %s4709_s1, 4  ;;  %s75_s26 = int_to_ptr.vmem [resolvable:$true] %s74_s26 }
  0x10   :  { %77 = dma.hbm_to_vmem [thread:$0]  %s73_s25, 16, %s75_s26, [#allocation8]  }
  0x11   :  { %4695 = dma.done.wait [#allocation3], 36864  }
  0x12   :  { %4696 = vsyncadd [#allocation3], 4294930432 }
  0x13   :  { %4697 = dma.done.wait [#allocation5], 112  }
  0x14   :  { %4698 = vsyncadd [#allocation5], 4294967184 }
  0x15   :  { %4699 = dma.done.wait [#allocation8], 272  }
  0x16   :  { %4700 = vsyncadd [#allocation8], 4294967024  ;;  %v3030_v0 = vld [vmem:[#allocation2 + $0x150] sm:$0xf]  ;;  %v4258_v1 = vld [vmem:[#allocation2 + $0x164] sm:$0xf0] }
  0x17   :  { %v3222_v2 = vld [vmem:[#allocation2 + $0x2d0] sm:$0xf]  ;;  %v3031_v3 = vor.u32 %v4258_v1, %v3030_v0  ;;  %v4306_v4 = vld [vmem:[#allocation2 + $0x2e4] sm:$0xf0]  ;;  %v3006_v11 = vld [vmem:[#allocation2 + $0x120] sm:$0xf] }
  0x18   :  { %v3414_v5 = vld [vmem:[#allocation2 + $0x450] sm:$0xf]  ;;  %v4354_v6 = vld [vmem:[#allocation2 + $0x464] sm:$0xf0]  ;;  %v3223_v7 = vor.u32 %v4306_v4, %v3222_v2  ;;  %v4252_v13 = vld [vmem:[#allocation2 + $0x134] sm:$0xf0] }
  0x19   :  { %v3415_v8 = vor.u32 %v4354_v6, %v3414_v5  ;;  %v3606_v9 = vld [vmem:[#allocation2 + $0x5d0] sm:$0xf]  ;;  %v4402_v10 = vld [vmem:[#allocation2 + $0x5e4] sm:$0xf0]  ;;  %1865 = vmatpush.bf16.msra.mxu0 %v3031_v3  ;;  %v3198_v14 = vld [vmem:[#allocation2 + $0x2a0] sm:$0xf]  ;;  %v3007_v16 = vor.u32 %v4252_v13, %v3006_v11 }
  0x1a   :  { %v3607_v12 = vor.u32 %v4402_v10, %v3606_v9  ;;  %v4300_v15 = vld [vmem:[#allocation2 + $0x2b4] sm:$0xf0]  ;;  %1878 = vmatpush.bf16.msra.mxu1 %v3223_v7  ;;  %v3390_v18 = vld [vmem:[#allocation2 + $0x420] sm:$0xf]  ;;  %v2982_v23 = vld [vmem:[#allocation2 + $0xf0] sm:$0xf] }
  0x1b   :  { %1891 = vmatpush.bf16.msra.mxu2 %v3415_v8  ;;  %v3199_v17 = vor.u32 %v4300_v15, %v3198_v14  ;;  %v4348_v19 = vld [vmem:[#allocation2 + $0x434] sm:$0xf0]  ;;  %v3582_v20 = vld [vmem:[#allocation2 + $0x5a0] sm:$0xf]  ;;  %v4246_v24 = vld [vmem:[#allocation2 + $0x104] sm:$0xf0] }
  0x1c   :  { %1904 = vmatpush.bf16.msra.mxu3 %v3607_v12  ;;  %v3391_v21 = vor.u32 %v4348_v19, %v3390_v18  ;;  %v4396_v22 = vld [vmem:[#allocation2 + $0x5b4] sm:$0xf0]  ;;  %v3174_v26 = vld [vmem:[#allocation2 + $0x270] sm:$0xf]  ;;  %v4294_v27 = vld [vmem:[#allocation2 + $0x284] sm:$0xf0]  ;;  %v2983_v29 = vor.u32 %v4246_v24, %v2982_v23 }
  0x1d   :  { %v3583_v25 = vor.u32 %v4396_v22, %v3582_v20  ;;  %v3366_v28 = vld [vmem:[#allocation2 + $0x3f0] sm:$0xf]  ;;  %1866 = vmatpush.bf16.msra.mxu0 %v3007_v16  ;;  %v4342_v30 = vld [vmem:[#allocation2 + $0x404] sm:$0xf0]  ;;  %v3175_v33 = vor.u32 %v4294_v27, %v3174_v26  ;;  %v2958_v35 = vld [vmem:[#allocation2 + $0xc0] sm:$0xf] }
  0x1e   :  { %v3558_v31 = vld [vmem:[#allocation2 + $0x570] sm:$0xf]  ;;  %v4390_v32 = vld [vmem:[#allocation2 + $0x584] sm:$0xf0]  ;;  %1879 = vmatpush.bf16.msra.mxu1 %v3199_v17  ;;  %v3367_v34 = vor.u32 %v4342_v30, %v3366_v28  ;;  %v4240_v36 = vld [vmem:[#allocation2 + $0xd4] sm:$0xf0] }
  0x1f   :  { %1892 = vmatpush.bf16.msra.mxu2 %v3391_v21  ;;  %v3150_v37 = vld [vmem:[#allocation2 + $0x240] sm:$0xf]  ;;  %v3559_v38 = vor.u32 %v4390_v32, %v3558_v31  ;;  %v4288_v39 = vld [vmem:[#allocation2 + $0x254] sm:$0xf0]  ;;  %v2959_v44 = vor.u32 %v4240_v36, %v2958_v35  ;;  %v2934_v47 = vld [vmem:[#allocation2 + $0x90] sm:$0xf] }
  0x20   :  { %1905 = vmatpush.bf16.msra.mxu3 %v3583_v25  ;;  %v3342_v40 = vld [vmem:[#allocation2 + $0x3c0] sm:$0xf]  ;;  %v4336_v41 = vld [vmem:[#allocation2 + $0x3d4] sm:$0xf0]  ;;  %v3151_v45 = vor.u32 %v4288_v39, %v3150_v37  ;;  %v4234_v48 = vld [vmem:[#allocation2 + $0xa4] sm:$0xf0] }
  0x21   :  { %v3534_v42 = vld [vmem:[#allocation2 + $0x540] sm:$0xf]  ;;  %v4384_v43 = vld [vmem:[#allocation2 + $0x554] sm:$0xf0]  ;;  %1867 = vmatpush.bf16.msra.mxu0 %v2983_v29  ;;  %v3343_v46 = vor.u32 %v4336_v41, %v3342_v40  ;;  %v3126_v49 = vld [vmem:[#allocation2 + $0x210] sm:$0xf]  ;;  %v2935_v56 = vor.u32 %v4234_v48, %v2934_v47 }
  0x22   :  { %1880 = vmatpush.bf16.msra.mxu1 %v3175_v33  ;;  %v3535_v50 = vor.u32 %v4384_v43, %v3534_v42  ;;  %v4282_v51 = vld [vmem:[#allocation2 + $0x224] sm:$0xf0]  ;;  %v3318_v52 = vld [vmem:[#allocation2 + $0x390] sm:$0xf]  ;;  %v2910_v59 = vld [vmem:[#allocation2 + $0x60] sm:$0xf] }
  0x23   :  { %1893 = vmatpush.bf16.msra.mxu2 %v3367_v34  ;;  %v4330_v53 = vld [vmem:[#allocation2 + $0x3a4] sm:$0xf0]  ;;  %v3510_v54 = vld [vmem:[#allocation2 + $0x510] sm:$0xf]  ;;  %v3127_v57 = vor.u32 %v4282_v51, %v3126_v49  ;;  %v4228_v60 = vld [vmem:[#allocation2 + $0x74] sm:$0xf0] }
  0x24   :  { %1906 = vmatpush.bf16.msra.mxu3 %v3559_v38  ;;  %v4378_v55 = vld [vmem:[#allocation2 + $0x524] sm:$0xf0]  ;;  %v3319_v58 = vor.u32 %v4330_v53, %v3318_v52  ;;  %v3102_v61 = vld [vmem:[#allocation2 + $0x1e0] sm:$0xf]  ;;  %v4276_v63 = vld [vmem:[#allocation2 + $0x1f4] sm:$0xf0]  ;;  %v2911_v4 = vor.u32 %v4228_v60, %v2910_v59 }
  0x25   :  { %1868 = vmatpush.bf16.msra.mxu0 %v2959_v44  ;;  %v3511_v62 = vor.u32 %v4378_v55, %v3510_v54  ;;  %v3294_v0 = vld [vmem:[#allocation2 + $0x360] sm:$0xf]  ;;  %v4324_v1 = vld [vmem:[#allocation2 + $0x374] sm:$0xf0]  ;;  %v3103_v5 = vor.u32 %v4276_v63, %v3102_v61  ;;  %v2886_v7 = vld [vmem:[#allocation2 + $0x30] sm:$0xf] }
  0x26   :  { %1881 = vmatpush.bf16.msra.mxu1 %v3151_v45  ;;  %v3486_v2 = vld [vmem:[#allocation2 + $0x4e0] sm:$0xf]  ;;  %v4372_v3 = vld [vmem:[#allocation2 + $0x4f4] sm:$0xf0]  ;;  %v3295_v6 = vor.u32 %v4324_v1, %v3294_v0  ;;  %v4222_v8 = vld [vmem:[#allocation2 + $0x44] sm:$0xf0] }
  0x27   :  { %1894 = vmatpush.bf16.msra.mxu2 %v3343_v46  ;;  %v3078_v9 = vld [vmem:[#allocation2 + $0x1b0] sm:$0xf]  ;;  %v3487_v10 = vor.u32 %v4372_v3, %v3486_v2  ;;  %v4270_v11 = vld [vmem:[#allocation2 + $0x1c4] sm:$0xf0]  ;;  %v2887_v16 = vor.u32 %v4222_v8, %v2886_v7  ;;  %v2862_v17 = vld [vmem:[#allocation2] sm:$0xf] }
  0x28   :  { %1907 = vmatpush.bf16.msra.mxu3 %v3535_v50  ;;  %v3270_v12 = vld [vmem:[#allocation2 + $0x330] sm:$0xf]  ;;  %v4318_v13 = vld [vmem:[#allocation2 + $0x344] sm:$0xf0]  ;;  %v4216_v18 = vld [vmem:[#allocation2 + $0x14] sm:$0xf0]  ;;  %v3079_v19 = vor.u32 %v4270_v11, %v3078_v9 }
  0x29   :  { %1869 = vmatpush.bf16.msra.mxu0 %v2935_v56  ;;  %v3462_v14 = vld [vmem:[#allocation2 + $0x4b0] sm:$0xf]  ;;  %v4366_v15 = vld [vmem:[#allocation2 + $0x4c4] sm:$0xf0]  ;;  %v3271_v20 = vor.u32 %v4318_v13, %v3270_v12  ;;  %v3054_v21 = vld [vmem:[#allocation2 + $0x180] sm:$0xf]  ;;  %v2863_v31 = vor.u32 %v4216_v18, %v2862_v17 }
  0x2a   :  { %1882 = vmatpush.bf16.msra.mxu1 %v3127_v57  ;;  %v4264_v22 = vld [vmem:[#allocation2 + $0x194] sm:$0xf0]  ;;  %v3246_v23 = vld [vmem:[#allocation2 + $0x300] sm:$0xf]  ;;  %v3463_v24 = vor.u32 %v4366_v15, %v3462_v14  ;;  %v3798_v28 = vld [vmem:[#allocation2 + $0x750] sm:$0xf] }
  0x2b   :  { %1895 = vmatpush.bf16.msra.mxu2 %v3319_v58  ;;  %v4312_v25 = vld [vmem:[#allocation2 + $0x314] sm:$0xf0]  ;;  %v3438_v26 = vld [vmem:[#allocation2 + $0x480] sm:$0xf]  ;;  %v4450_v29 = vld [vmem:[#allocation2 + $0x764] sm:$0xf0]  ;;  %v3055_v35 = vor.u32 %v4264_v22, %v3054_v21 }
  0x2c   :  { %1908 = vmatpush.bf16.msra.mxu3 %v3511_v62  ;;  %v4360_v27 = vld [vmem:[#allocation2 + $0x494] sm:$0xf0]  ;;  %v3990_v30 = vld [vmem:[#allocation2 + $0x8d0] sm:$0xf]  ;;  %v4498_v32 = vld [vmem:[#allocation2 + $0x8e4] sm:$0xf0]  ;;  %v3247_v36 = vor.u32 %v4312_v25, %v3246_v23  ;;  %v3799_v40 = vor.u32 %v4450_v29, %v3798_v28 }
  0x2d   :  { %1870 = vmatpush.bf16.msra.mxu0 %v2911_v4  ;;  %v4255_v33 = vld [vmem:[#allocation2 + $0x154] sm:$0xf]  ;;  %v3032_v34 = vld [vmem:[#allocation2 + $0x168] sm:$0xf0]  ;;  %v3439_v39 = vor.u32 %v4360_v27, %v3438_v26  ;;  %v3991_v41 = vor.u32 %v4498_v32, %v3990_v30  ;;  %v3774_v43 = vld [vmem:[#allocation2 + $0x720] sm:$0xf] }
  0x2e   :  { %1883 = vmatpush.bf16.msra.mxu1 %v3103_v5  ;;  %v4303_v37 = vld [vmem:[#allocation2 + $0x2d4] sm:$0xf]  ;;  %v3224_v38 = vld [vmem:[#allocation2 + $0x2e8] sm:$0xf0]  ;;  %v3035_v42 = vor.u32 %v4255_v33, %v3032_v34  ;;  %v4444_v44 = vld [vmem:[#allocation2 + $0x734] sm:$0xf0] }
  0x2f   :  { %1896 = vmatpush.bf16.msra.mxu2 %v3295_v6  ;;  %v3966_v45 = vld [vmem:[#allocation2 + $0x8a0] sm:$0xf]  ;;  %v3227_v46 = vor.u32 %v4303_v37, %v3224_v38  ;;  %v4492_v47 = vld [vmem:[#allocation2 + $0x8b4] sm:$0xf0]  ;;  %v4249_v48 = vld [vmem:[#allocation2 + $0x124] sm:$0xf]  ;;  %v3775_v52 = vor.u32 %v4444_v44, %v3774_v43 }
  0x30   :  { %1909 = vmatpush.bf16.msra.mxu3 %v3487_v10  ;;  %v3008_v49 = vld [vmem:[#allocation2 + $0x138] sm:$0xf0]  ;;  %v4297_v50 = vld [vmem:[#allocation2 + $0x2a4] sm:$0xf]  ;;  %v3750_v53 = vld [vmem:[#allocation2 + $0x6f0] sm:$0xf]  ;;  %v3967_v54 = vor.u32 %v4492_v47, %v3966_v45 }
  0x31   :  { %1871 = vmatpush.bf16.msra.mxu0 %v2887_v16  ;;  %v3200_v51 = vld [vmem:[#allocation2 + $0x2b8] sm:$0xf0]  ;;  %v3011_v55 = vor.u32 %v4249_v48, %v3008_v49  ;;  %v4438_v56 = vld [vmem:[#allocation2 + $0x704] sm:$0xf0]  ;;  %v3942_v57 = vld [vmem:[#allocation2 + $0x870] sm:$0xf] }
  0x32   :  { %1884 = vmatpush.bf16.msra.mxu1 %v3079_v19  ;;  %v4486_v58 = vld [vmem:[#allocation2 + $0x884] sm:$0xf0]  ;;  %v3203_v59 = vor.u32 %v4297_v50, %v3200_v51  ;;  %v4243_v60 = vld [vmem:[#allocation2 + $0xf4] sm:$0xf]  ;;  %v2984_v61 = vld [vmem:[#allocation2 + $0x108] sm:$0xf0]  ;;  %v3751_v0 = vor.u32 %v4438_v56, %v3750_v53 }
  0x33   :  { %1897 = vmatpush.bf16.msra.mxu2 %v3271_v20  ;;  %v4291_v62 = vld [vmem:[#allocation2 + $0x274] sm:$0xf]  ;;  %v3176_v63 = vld [vmem:[#allocation2 + $0x288] sm:$0xf0]  ;;  %v3943_v1 = vor.u32 %v4486_v58, %v3942_v57  ;;  %v99_v3 = vld [vmem:[%s5003_s0] sm:$0xff]  ;;  %v2987_v4 = vor.u32 %v4243_v60, %v2984_v61  ;;  %vm2835_vm1 = vcmask 261120  }
  0x34   :  { %1910 = vmatpush.bf16.msra.mxu3 %v3463_v24  ;;  %v100_v2 = vld [vmem:[%s5003_s0 + $0x8] sm:$0xff]  ;;  %v3726_v5 = vld [vmem:[#allocation2 + $0x6c0] sm:$0xf]  ;;  %v4432_v6 = vld [vmem:[#allocation2 + $0x6d4] sm:$0xf0]  ;;  %v407_v9 = vunpack.c.l.b16 %v99_v3  ;;  %v3179_v11 = vor.u32 %v4291_v62, %v3176_v63  ;;  %v408_v15 = vunpack.c.h.b16 %v99_v3 }
  0x35   :  { %1872 = vmatpush.bf16.msra.mxu0 %v2863_v31  ;;  %v3918_v7 = vld [vmem:[#allocation2 + $0x840] sm:$0xf]  ;;  %v409_v8 = vunpack.c.l.b16 %v100_v2  ;;  %v410_v10 = vunpack.c.h.b16 %v100_v2  ;;  %v4480_v12 = vld [vmem:[#allocation2 + $0x854] sm:$0xf0]  ;;  %v4237_v13 = vld [vmem:[#allocation2 + $0xc4] sm:$0xf]  ;;  %v3727_v21 = vor.u32 %v4432_v6, %v3726_v5 }
  0x36   :  { %1885 = vmatpush.bf16.msra.mxu1 %v3055_v35  ;;  %v2960_v14 = vld [vmem:[#allocation2 + $0xd8] sm:$0xf0]  ;;  %v4285_v16 = vld [vmem:[#allocation2 + $0x244] sm:$0xf]  ;;  %v4773_v19 = vpack.c.b16 %v407_v9, %v407_v9  ;;  %v4777_v22 = vpack.c.b16 %v408_v15, %v408_v15  ;;  %v3919_v23 = vor.u32 %v4480_v12, %v3918_v7  ;;  %v3702_v25 = vld [vmem:[#allocation2 + $0x690] sm:$0xf] }
  0x37   :  { %1898 = vmatpush.bf16.msra.mxu2 %v3247_v36  ;;  %v3152_v17 = vld [vmem:[#allocation2 + $0x258] sm:$0xf0]  ;;  %v4771_v18 = vpack.c.b16 %v409_v8, %v409_v8  ;;  %v4775_v20 = vpack.c.b16 %v410_v10, %v410_v10  ;;  %v2963_v24 = vor.u32 %v4237_v13, %v2960_v14  ;;  %v4426_v26 = vld [vmem:[#allocation2 + $0x6a4] sm:$0xf0]  ;;  %v3894_v27 = vld [vmem:[#allocation2 + $0x810] sm:$0xf] }
  0x38   :  { %1911 = vmatpush.bf16.msra.mxu3 %v3439_v39  ;;  %v3155_v28 = vor.u32 %v4285_v16, %v3152_v17  ;;  %v4474_v29 = vld [vmem:[#allocation2 + $0x824] sm:$0xf0]  ;;  %v4231_v30 = vld [vmem:[#allocation2 + $0x94] sm:$0xf]  ;;  %v2936_v31 = vld [vmem:[#allocation2 + $0xa8] sm:$0xf0]  ;;  %1873 = vmatmul.bf16.vlgmr.msra.gmra.mxu0 %v4773_v19  ;;  %v3703_v34 = vor.u32 %v4426_v26, %v3702_v25 }
  0x39   :  { %1917 = vmatpush.bf16.msrb.mxu0 %v3799_v40  ;;  %v4279_v32 = vld [vmem:[#allocation2 + $0x214] sm:$0xf]  ;;  %v3128_v33 = vld [vmem:[#allocation2 + $0x228] sm:$0xf0]  ;;  %1886 = vmatmul.bf16.vlgmr.msra.gmra.mxu1 %v4777_v22  ;;  %v3895_v35 = vor.u32 %v4474_v29, %v3894_v27  ;;  %v2939_v36 = vor.u32 %v4231_v30, %v2936_v31  ;;  %v3678_v37 = vld [vmem:[#allocation2 + $0x660] sm:$0xf] }
  0x3a   :  { %1930 = vmatpush.bf16.msrb.mxu1 %v3991_v41  ;;  %1899 = vmatmul.bf16.vlgmr.msra.gmra.mxu2 %v4771_v18  ;;  %v4420_v38 = vld [vmem:[#allocation2 + $0x674] sm:$0xf0]  ;;  %v3870_v39 = vld [vmem:[#allocation2 + $0x7e0] sm:$0xf]  ;;  %v3131_v40 = vor.u32 %v4279_v32, %v3128_v33  ;;  %v2912_v43 = vld [vmem:[#allocation2 + $0x78] sm:$0xf0] }
  0x3b   :  { %1943 = vmatpush.bf16.msrb.mxu2 %v3035_v42  ;;  %1912 = vmatmul.bf16.vlgmr.msra.gmra.mxu3 %v4775_v20  ;;  %v4468_v41 = vld [vmem:[#allocation2 + $0x7f4] sm:$0xf0]  ;;  %v4225_v42 = vld [vmem:[#allocation2 + $0x64] sm:$0xf]  ;;  %v3104_v45 = vld [vmem:[#allocation2 + $0x1f8] sm:$0xf0] }
  0x3c   :  { %1956 = vmatpush.bf16.msrb.mxu3 %v3227_v46  ;;  %v4273_v44 = vld [vmem:[#allocation2 + $0x1e4] sm:$0xf]  ;;  %v3679_v46 = vor.u32 %v4420_v38, %v3678_v37  ;;  %v3871_v47 = vor.u32 %v4468_v41, %v3870_v39  ;;  %v2915_v48 = vor.u32 %v4225_v42, %v2912_v43  ;;  %v3654_v49 = vld [vmem:[#allocation2 + $0x630] sm:$0xf]  ;;  %v4414_v50 = vld [vmem:[#allocation2 + $0x644] sm:$0xf0] }
  0x3d   :  { %1918 = vmatpush.bf16.msrb.mxu0 %v3775_v52  ;;  %v3846_v51 = vld [vmem:[#allocation2 + $0x7b0] sm:$0xf]  ;;  %v3107_v52 = vor.u32 %v4273_v44, %v3104_v45  ;;  %v4462_v53 = vld [vmem:[#allocation2 + $0x7c4] sm:$0xf0]  ;;  %v4267_v56 = vld [vmem:[#allocation2 + $0x1b4] sm:$0xf]  ;;  %v3655_v58 = vor.u32 %v4414_v50, %v3654_v49 }
  0x3e   :  { %1931 = vmatpush.bf16.msrb.mxu1 %v3967_v54  ;;  %v4219_v54 = vld [vmem:[#allocation2 + $0x34] sm:$0xf]  ;;  %v3080_v57 = vld [vmem:[#allocation2 + $0x1c8] sm:$0xf0]  ;;  %v4408_v60 = vld [vmem:[#allocation2 + $0x614] sm:$0xf0]  ;;  %v3847_v62 = vor.u32 %v4462_v53, %v3846_v51 }
  0x3f   :  { %1944 = vmatpush.bf16.msrb.mxu2 %v3011_v55  ;;  %v2888_v55 = vld [vmem:[#allocation2 + $0x48] sm:$0xf0]  ;;  %v3822_v61 = vld [vmem:[#allocation2 + $0x780] sm:$0xf]  ;;  %v101_v2 = vld [vmem:[%s5003_s0 + $0x10] sm:$0xff]  ;;  %v3083_v3 = vor.u32 %v4267_v56, %v3080_v57 }
  0x40   :  { %1957 = vmatpush.bf16.msrb.mxu3 %v3203_v59  ;;  %v3630_v59 = vld [vmem:[#allocation2 + $0x600] sm:$0xf]  ;;  %v2891_v63 = vor.u32 %v4219_v54, %v2888_v55  ;;  %v4261_v5 = vld [vmem:[#allocation2 + $0x184] sm:$0xf]  ;;  %v3056_v6 = vld [vmem:[#allocation2 + $0x198] sm:$0xf0]  ;;  %v411_v14 = vunpack.c.l.b16 %v101_v2 }
  0x41   :  { %1919 = vmatpush.bf16.msrb.mxu0 %v3751_v0  ;;  %v4456_v0 = vld [vmem:[#allocation2 + $0x794] sm:$0xf0]  ;;  %v4351_v7 = vld [vmem:[#allocation2 + $0x454] sm:$0xf]  ;;  %v3416_v8 = vld [vmem:[#allocation2 + $0x468] sm:$0xf0]  ;;  %v3631_v10 = vor.u32 %v4408_v60, %v3630_v59 }
  0x42   :  { %1932 = vmatpush.bf16.msrb.mxu1 %v3943_v1  ;;  %v4213_v1 = vld [vmem:[#allocation2 + $0x4] sm:$0xf]  ;;  %v4399_v9 = vld [vmem:[#allocation2 + $0x5d4] sm:$0xf]  ;;  %v3800_v13 = vld [vmem:[#allocation2 + $0x768] sm:$0xf0]  ;;  %v3823_v15 = vor.u32 %v4456_v0, %v3822_v61  ;;  %v3419_v25 = vor.u32 %v4351_v7, %v3416_v8 }
  0x43   :  { %1945 = vmatpush.bf16.msrb.mxu2 %v2987_v4  ;;  %v2864_v4 = vld [vmem:[#allocation2 + $0x18] sm:$0xf0]  ;;  %v4447_v12 = vld [vmem:[#allocation2 + $0x754] sm:$0xf]  ;;  %v4393_v30 = vld [vmem:[#allocation2 + $0x5a4] sm:$0xf] }
  0x44   :  { %1958 = vmatpush.bf16.msrb.mxu3 %v3179_v11  ;;  %v3608_v11 = vld [vmem:[#allocation2 + $0x5e8] sm:$0xf0]  ;;  %v2867_v16 = vor.u32 %v4213_v1, %v2864_v4  ;;  %v4495_v17 = vld [vmem:[#allocation2 + $0x8d4] sm:$0xf]  ;;  %v3803_v27 = vor.u32 %v4447_v12, %v3800_v13  ;;  %v3392_v29 = vld [vmem:[#allocation2 + $0x438] sm:$0xf0] }
  0x45   :  { %1920 = vmatpush.bf16.msrb.mxu0 %v3727_v21  ;;  %v3992_v21 = vld [vmem:[#allocation2 + $0x8e8] sm:$0xf0]  ;;  %v3611_v26 = vor.u32 %v4399_v9, %v3608_v11  ;;  %v3584_v32 = vld [vmem:[#allocation2 + $0x5b8] sm:$0xf0]  ;;  %v4441_v33 = vld [vmem:[#allocation2 + $0x724] sm:$0xf] }
  0x46   :  { %1933 = vmatpush.bf16.msrb.mxu1 %v3919_v23  ;;  %v412_v23 = vunpack.c.h.b16 %v101_v2  ;;  %v3995_v31 = vor.u32 %v4495_v17, %v3992_v21  ;;  %v3968_v37 = vld [vmem:[#allocation2 + $0x8b8] sm:$0xf0]  ;;  %v4339_v42 = vld [vmem:[#allocation2 + $0x3f4] sm:$0xf]  ;;  %v3368_v43 = vld [vmem:[#allocation2 + $0x408] sm:$0xf0] }
  0x47   :  { %1946 = vmatpush.bf16.msrb.mxu2 %v2963_v24  ;;  %v3059_v24 = vor.u32 %v4261_v5, %v3056_v6  ;;  %v4387_v44 = vld [vmem:[#allocation2 + $0x574] sm:$0xf]  ;;  %v3944_v50 = vld [vmem:[#allocation2 + $0x888] sm:$0xf0]  ;;  %v3371_v51 = vor.u32 %v4339_v42, %v3368_v43  ;;  %v4333_v54 = vld [vmem:[#allocation2 + $0x3c4] sm:$0xf] }
  0x48   :  { %1959 = vmatpush.bf16.msrb.mxu3 %v3155_v28  ;;  %v4345_v28 = vld [vmem:[#allocation2 + $0x424] sm:$0xf]  ;;  %v4788_v38 = vpack.c.b16 %v412_v23, %v412_v23  ;;  %v4483_v49 = vld [vmem:[#allocation2 + $0x874] sm:$0xf]  ;;  %v3344_v55 = vld [vmem:[#allocation2 + $0x3d8] sm:$0xf0] }
  0x49   :  { %1921 = vmatpush.bf16.msrb.mxu0 %v3703_v34  ;;  %v3776_v34 = vld [vmem:[#allocation2 + $0x738] sm:$0xf0]  ;;  %v3395_v39 = vor.u32 %v4345_v28, %v3392_v29  ;;  %v4381_v56 = vld [vmem:[#allocation2 + $0x544] sm:$0xf]  ;;  %v3947_v57 = vor.u32 %v4483_v49, %v3944_v50  ;;  %v4327_v2 = vld [vmem:[#allocation2 + $0x394] sm:$0xf] }
  0x4a   :  { %1934 = vmatpush.bf16.msrb.mxu1 %v3895_v35  ;;  %v4786_v35 = vpack.c.b16 %v411_v14, %v411_v14  ;;  %v3779_v41 = vor.u32 %v4441_v33, %v3776_v34  ;;  %v4429_v59 = vld [vmem:[#allocation2 + $0x6c4] sm:$0xf]  ;;  %v3728_v60 = vld [vmem:[#allocation2 + $0x6d8] sm:$0xf0]  ;;  %v4375_v4 = vld [vmem:[#allocation2 + $0x514] sm:$0xf] }
  0x4b   :  { %1947 = vmatpush.bf16.msrb.mxu2 %v2939_v36  ;;  %v4489_v36 = vld [vmem:[#allocation2 + $0x8a4] sm:$0xf]  ;;  %v3731_v1 = vor.u32 %v4429_v59, %v3728_v60  ;;  %v3512_v6 = vld [vmem:[#allocation2 + $0x528] sm:$0xf0]  ;;  %v4423_v7 = vld [vmem:[#allocation2 + $0x694] sm:$0xf] }
  0x4c   :  { %1960 = vmatpush.bf16.msrb.mxu3 %v3131_v40  ;;  %v3587_v40 = vor.u32 %v4393_v30, %v3584_v32  ;;  %v3971_v45 = vor.u32 %v4489_v36, %v3968_v37  ;;  %v4477_v61 = vld [vmem:[#allocation2 + $0x844] sm:$0xf]  ;;  %v3704_v8 = vld [vmem:[#allocation2 + $0x6a8] sm:$0xf0]  ;;  %v4471_v9 = vld [vmem:[#allocation2 + $0x814] sm:$0xf]  ;;  %v3515_v13 = vor.u32 %v4375_v4, %v3512_v6 }
  0x4d   :  { %1922 = vmatpush.bf16.msrb.mxu0 %v3679_v46  ;;  %v3560_v46 = vld [vmem:[#allocation2 + $0x588] sm:$0xf0]  ;;  %v4321_v12 = vld [vmem:[#allocation2 + $0x364] sm:$0xf]  ;;  %v3707_v14 = vor.u32 %v4423_v7, %v3704_v8  ;;  %v3488_v17 = vld [vmem:[#allocation2 + $0x4f8] sm:$0xf0] }
  0x4e   :  { %1935 = vmatpush.bf16.msrb.mxu1 %v3871_v47  ;;  %v4435_v47 = vld [vmem:[#allocation2 + $0x6f4] sm:$0xf]  ;;  %v4417_v23 = vld [vmem:[#allocation2 + $0x664] sm:$0xf]  ;;  %v3464_v34 = vld [vmem:[#allocation2 + $0x4c8] sm:$0xf0] }
  0x4f   :  { %1948 = vmatpush.bf16.msrb.mxu2 %v2915_v48  ;;  %v3752_v48 = vld [vmem:[#allocation2 + $0x708] sm:$0xf0]  ;;  %v4315_v30 = vld [vmem:[#allocation2 + $0x334] sm:$0xf]  ;;  %v4309_v42 = vld [vmem:[#allocation2 + $0x304] sm:$0xf] }
  0x50   :  { %1961 = vmatpush.bf16.msrb.mxu3 %v3107_v52  ;;  %v3563_v52 = vor.u32 %v4387_v44, %v3560_v46  ;;  %v3755_v53 = vor.u32 %v4435_v47, %v3752_v48  ;;  %v4363_v32 = vld [vmem:[#allocation2 + $0x4b4] sm:$0xf]  ;;  %v3656_v37 = vld [vmem:[#allocation2 + $0x648] sm:$0xf0]  ;;  %v3248_v43 = vld [vmem:[#allocation2 + $0x318] sm:$0xf0] }
  0x51   :  { %1923 = vmatpush.bf16.msrb.mxu0 %v3655_v58  ;;  %v3536_v58 = vld [vmem:[#allocation2 + $0x558] sm:$0xf0]  ;;  %v4411_v36 = vld [vmem:[#allocation2 + $0x634] sm:$0xf]  ;;  %v3467_v44 = vor.u32 %v4363_v32, %v3464_v34  ;;  %v4357_v46 = vld [vmem:[#allocation2 + $0x484] sm:$0xf] }
  0x52   :  { %1936 = vmatpush.bf16.msrb.mxu1 %v3847_v62  ;;  %v3920_v62 = vld [vmem:[#allocation2 + $0x858] sm:$0xf0]  ;;  %v3539_v0 = vor.u32 %v4381_v56, %v3536_v58  ;;  %v4405_v48 = vld [vmem:[#allocation2 + $0x604] sm:$0xf]  ;;  %v3251_v56 = vor.u32 %v4309_v42, %v3248_v43  ;;  %v3422_v58 = vld [vmem:[#allocation2 + $0x458] sm:$0xf] }
  0x53   :  { %1949 = vmatpush.bf16.msrb.mxu2 %v2891_v63  ;;  %v3347_v63 = vor.u32 %v4333_v54, %v3344_v55  ;;  %v3923_v5 = vor.u32 %v4477_v61, %v3920_v62  ;;  %v3440_v47 = vld [vmem:[#allocation2 + $0x498] sm:$0xf0]  ;;  %v4259_v54 = vld [vmem:[#allocation2 + $0x16c] sm:$0xf0]  ;;  %v3230_v55 = vld [vmem:[#allocation2 + $0x2d8] sm:$0xf] }
  0x54   :  { %1962 = vmatpush.bf16.msrb.mxu3 %v3083_v3  ;;  %v3320_v3 = vld [vmem:[#allocation2 + $0x3a8] sm:$0xf0]  ;;  %v3632_v50 = vld [vmem:[#allocation2 + $0x618] sm:$0xf0]  ;;  %v4355_v59 = vld [vmem:[#allocation2 + $0x46c] sm:$0xf0]  ;;  %v3443_v60 = vor.u32 %v4357_v46, %v3440_v47 }
  0x55   :  { %1924 = vmatpush.bf16.msrb.mxu0 %v3631_v10  ;;  %v3896_v10 = vld [vmem:[#allocation2 + $0x828] sm:$0xf0]  ;;  %v3323_v11 = vor.u32 %v4327_v2, %v3320_v3  ;;  %v3635_v61 = vor.u32 %v4405_v48, %v3632_v50  ;;  %v3614_v62 = vld [vmem:[#allocation2 + $0x5d8] sm:$0xf]  ;;  %v3423_v3 = vor.u32 %v4355_v59, %v3422_v58  ;;  %v3014_v4 = vld [vmem:[#allocation2 + $0x128] sm:$0xf] }
  0x56   :  { %1937 = vmatpush.bf16.msrb.mxu1 %v3823_v15  ;;  %v3296_v15 = vld [vmem:[#allocation2 + $0x378] sm:$0xf0]  ;;  %v3899_v21 = vor.u32 %v4471_v9, %v3896_v10  ;;  %v3206_v6 = vld [vmem:[#allocation2 + $0x2a8] sm:$0xf]  ;;  %v4301_v8 = vld [vmem:[#allocation2 + $0x2bc] sm:$0xf0] }
  0x57   :  { %1950 = vmatpush.bf16.msrb.mxu2 %v2867_v16  ;;  %v4369_v16 = vld [vmem:[#allocation2 + $0x4e4] sm:$0xf]  ;;  %v3398_v9 = vld [vmem:[#allocation2 + $0x428] sm:$0xf]  ;;  %v4349_v10 = vld [vmem:[#allocation2 + $0x43c] sm:$0xf0] }
  0x58   :  { %1963 = vmatpush.bf16.msrb.mxu3 %v3059_v24  ;;  %1925 = vmatmul.bf16.vlgmr.msrb.gmra.mxu0 %v4786_v35  ;;  %v3680_v24 = vld [vmem:[#allocation2 + $0x678] sm:$0xf0]  ;;  %v3491_v28 = vor.u32 %v4369_v16, %v3488_v17  ;;  %v2990_v16 = vld [vmem:[#allocation2 + $0xf8] sm:$0xf]  ;;  %v4247_v17 = vld [vmem:[#allocation2 + $0x10c] sm:$0xf0] }
  0x59   :  { %1969 = vmatpush.bf16.msra.mxu0 %v3419_v25  ;;  %1938 = vmatmul.bf16.vlgmr.msrb.gmra.mxu1 %v4788_v38  ;;  %v4465_v25 = vld [vmem:[#allocation2 + $0x7e4] sm:$0xf]  ;;  %v3683_v29 = vor.u32 %v4417_v23, %v3680_v24  ;;  %v4295_v24 = vld [vmem:[#allocation2 + $0x28c] sm:$0xf0]  ;;  %v2966_v32 = vld [vmem:[#allocation2 + $0xc8] sm:$0xf] }
  0x5a   :  { %1982 = vmatpush.bf16.msra.mxu1 %v3611_v26  ;;  %1951 = vmatmul.bf16.vlgmr.msrb.gmra.mxu2 %v4773_v19  ;;  %v3872_v26 = vld [vmem:[#allocation2 + $0x7f8] sm:$0xf0]  ;;  %v3158_v34 = vld [vmem:[#allocation2 + $0x248] sm:$0xf]  ;;  %v4385_v42 = vld [vmem:[#allocation2 + $0x55c] sm:$0xf0] }
  0x5b   :  { %1995 = vmatpush.bf16.msra.mxu2 %v3803_v27  ;;  %1964 = vmatmul.bf16.vlgmr.msrb.gmra.mxu3 %v4777_v22  ;;  %v3299_v27 = vor.u32 %v4321_v12, %v3296_v15  ;;  %v3875_v33 = vor.u32 %v4465_v25, %v3872_v26  ;;  %v4397_v12 = vld [vmem:[#allocation2 + $0x5bc] sm:$0xf0]  ;;  %v3399_v15 = vor.u32 %v4349_v10, %v3398_v9  ;;  %v3374_v25 = vld [vmem:[#allocation2 + $0x3f8] sm:$0xf]  ;;  %v4343_v26 = vld [vmem:[#allocation2 + $0x40c] sm:$0xf0] }
  0x5c   :  { %2008 = vmatpush.bf16.msra.mxu3 %v3995_v31  ;;  %v3272_v31 = vld [vmem:[#allocation2 + $0x348] sm:$0xf0]  ;;  %v2942_v46 = vld [vmem:[#allocation2 + $0x98] sm:$0xf]  ;;  %v4235_v47 = vld [vmem:[#allocation2 + $0xac] sm:$0xf0] }
  0x5d   :  { %1970 = vmatpush.bf16.msra.mxu0 %v3395_v39  ;;  %v4459_v39 = vld [vmem:[#allocation2 + $0x7b4] sm:$0xf]  ;;  %v3134_v48 = vld [vmem:[#allocation2 + $0x218] sm:$0xf]  ;;  %v4283_v50 = vld [vmem:[#allocation2 + $0x22c] sm:$0xf0] }
  0x5e   :  { %1983 = vmatpush.bf16.msra.mxu1 %v3587_v40  ;;  %v3848_v40 = vld [vmem:[#allocation2 + $0x7c8] sm:$0xf0]  ;;  %v2918_v58 = vld [vmem:[#allocation2 + $0x68] sm:$0xf]  ;;  %v4229_v59 = vld [vmem:[#allocation2 + $0x7c] sm:$0xf0] }
  0x5f   :  { %1996 = vmatpush.bf16.msra.mxu2 %v3779_v41  ;;  %v3275_v41 = vor.u32 %v4315_v30, %v3272_v31  ;;  %v3851_v49 = vor.u32 %v4459_v39, %v3848_v40  ;;  %v3375_v31 = vor.u32 %v4343_v26, %v3374_v25  ;;  %v3350_v39 = vld [vmem:[#allocation2 + $0x3c8] sm:$0xf]  ;;  %v4337_v40 = vld [vmem:[#allocation2 + $0x3dc] sm:$0xf0]  ;;  %v4271_v10 = vld [vmem:[#allocation2 + $0x1cc] sm:$0xf0] }
  0x60   :  { %2009 = vmatpush.bf16.msra.mxu3 %v3971_v45  ;;  %v3659_v45 = vor.u32 %v4411_v36, %v3656_v37  ;;  %v4289_v37 = vld [vmem:[#allocation2 + $0x25c] sm:$0xf0]  ;;  %v3254_v26 = vld [vmem:[#allocation2 + $0x308] sm:$0xf] }
  0x61   :  { %1971 = vmatpush.bf16.msra.mxu0 %v3371_v51  ;;  %v4453_v51 = vld [vmem:[#allocation2 + $0x784] sm:$0xf]  ;;  %v4265_v25 = vld [vmem:[#allocation2 + $0x19c] sm:$0xf0] }
  0x62   :  { %1984 = vmatpush.bf16.msra.mxu1 %v3563_v52  ;;  %v3824_v52 = vld [vmem:[#allocation2 + $0x798] sm:$0xf0] }
  0x63   :  { %1997 = vmatpush.bf16.msra.mxu2 %v3755_v53  ;;  %v3038_v53 = vld [vmem:[#allocation2 + $0x158] sm:$0xf] }
  0x64   :  { %2010 = vmatpush.bf16.msra.mxu3 %v3947_v57  ;;  %v4307_v57 = vld [vmem:[#allocation2 + $0x2ec] sm:$0xf0] }
  0x65   :  { %1972 = vmatpush.bf16.msra.mxu0 %v3347_v63  ;;  %v4403_v63 = vld [vmem:[#allocation2 + $0x5ec] sm:$0xf0]  ;;  %v3231_v2 = vor.u32 %v4307_v57, %v3230_v55  ;;  %v2943_v55 = vor.u32 %v4235_v47, %v2942_v46 }
  0x66   :  { %1985 = vmatpush.bf16.msra.mxu1 %v3539_v0  ;;  %v3827_v0 = vor.u32 %v4453_v51, %v3824_v52  ;;  %v3615_v7 = vor.u32 %v4403_v63, %v3614_v62  ;;  %v3326_v51 = vld [vmem:[#allocation2 + $0x398] sm:$0xf]  ;;  %v4331_v52 = vld [vmem:[#allocation2 + $0x3ac] sm:$0xf0]  ;;  %v4277_v62 = vld [vmem:[#allocation2 + $0x1fc] sm:$0xf0] }
  0x67   :  { %1998 = vmatpush.bf16.msra.mxu2 %v3731_v1  ;;  %v3039_v1 = vor.u32 %v4259_v54, %v3038_v53  ;;  %v3518_v53 = vld [vmem:[#allocation2 + $0x518] sm:$0xf]  ;;  %v4379_v54 = vld [vmem:[#allocation2 + $0x52c] sm:$0xf0]  ;;  %v3327_v57 = vor.u32 %v4331_v52, %v3326_v51  ;;  %v3302_v63 = vld [vmem:[#allocation2 + $0x368] sm:$0xf] }
  0x68   :  { %2011 = vmatpush.bf16.msra.mxu3 %v3923_v5  ;;  %v4253_v5 = vld [vmem:[#allocation2 + $0x13c] sm:$0xf0] }
  0x69   :  { %1973 = vmatpush.bf16.msra.mxu0 %v3323_v11  ;;  %v3590_v11 = vld [vmem:[#allocation2 + $0x5a8] sm:$0xf]  ;;  %v4493_v52 = vld [vmem:[#allocation2 + $0x8bc] sm:$0xf0] }
  0x6a   :  { %1986 = vmatpush.bf16.msra.mxu1 %v3515_v13  ;;  %v3015_v13 = vor.u32 %v4253_v5, %v3014_v4  ;;  %v3591_v23 = vor.u32 %v4397_v12, %v3590_v11  ;;  %v3278_v11 = vld [vmem:[#allocation2 + $0x338] sm:$0xf]  ;;  %v4319_v12 = vld [vmem:[#allocation2 + $0x34c] sm:$0xf0] }
  0x6b   :  { %1999 = vmatpush.bf16.msra.mxu2 %v3707_v14  ;;  %v3207_v14 = vor.u32 %v4301_v8, %v3206_v6  ;;  %v2894_v6 = vld [vmem:[#allocation2 + $0x38] sm:$0xf] }
  0x6c   :  { %2012 = vmatpush.bf16.msra.mxu3 %v3899_v21  ;;  %v3182_v21 = vld [vmem:[#allocation2 + $0x278] sm:$0xf] }
  0x6d   :  { %1974 = vmatpush.bf16.msra.mxu0 %v3299_v27  ;;  %v3566_v27 = vld [vmem:[#allocation2 + $0x578] sm:$0xf]  ;;  %v3183_v30 = vor.u32 %v4295_v24, %v3182_v21  ;;  %v3062_v24 = vld [vmem:[#allocation2 + $0x188] sm:$0xf] }
  0x6e   :  { %1987 = vmatpush.bf16.msra.mxu1 %v3491_v28  ;;  %v4391_v28 = vld [vmem:[#allocation2 + $0x58c] sm:$0xf0]  ;;  %v3086_v8 = vld [vmem:[#allocation2 + $0x1b8] sm:$0xf] }
  0x6f   :  { %2000 = vmatpush.bf16.msra.mxu2 %v3683_v29  ;;  %v2991_v29 = vor.u32 %v4247_v17, %v2990_v16  ;;  %v3567_v36 = vor.u32 %v4391_v28, %v3566_v27  ;;  %v2870_v16 = vld [vmem:[#allocation2 + $0x8] sm:$0xf]  ;;  %v4217_v17 = vld [vmem:[#allocation2 + $0x1c] sm:$0xf0]  ;;  %v3087_v21 = vor.u32 %v4271_v10, %v3086_v8 }
  0x70   :  { %2013 = vmatpush.bf16.msra.mxu3 %v3875_v33  ;;  %v4241_v33 = vld [vmem:[#allocation2 + $0xdc] sm:$0xf0]  ;;  %v3734_v8 = vld [vmem:[#allocation2 + $0x6c8] sm:$0xf] }
  0x71   :  { %1975 = vmatpush.bf16.msra.mxu0 %v3275_v41  ;;  %v3542_v41 = vld [vmem:[#allocation2 + $0x548] sm:$0xf]  ;;  %v2967_v43 = vor.u32 %v4241_v33, %v2966_v32  ;;  %v4313_v28 = vld [vmem:[#allocation2 + $0x31c] sm:$0xf0]  ;;  %v4451_v32 = vld [vmem:[#allocation2 + $0x76c] sm:$0xf0] }
  0x72   :  { %1988 = vmatpush.bf16.msra.mxu1 %v3467_v44  ;;  %v3159_v44 = vor.u32 %v4289_v37, %v3158_v34  ;;  %v3998_v33 = vld [vmem:[#allocation2 + $0x8d8] sm:$0xf]  ;;  %v2871_v34 = vor.u32 %v4217_v17, %v2870_v16  ;;  %v4256_v37 = vld [vmem:[#allocation2 + $0x15c] sm:$0xf]  ;;  %v3926_v10 = vld [vmem:[#allocation2 + $0x848] sm:$0xf] }
  0x73   :  { %2001 = vmatpush.bf16.msra.mxu2 %v3659_v45  ;;  %v3351_v45 = vor.u32 %v4337_v40, %v3350_v39  ;;  %v3040_v39 = vld [vmem:[#allocation2 + $0x170] sm:$0xf0]  ;;  %v3063_v40 = vor.u32 %v4265_v25, %v3062_v24  ;;  %v3160_v16 = vld [vmem:[#allocation2 + $0x260] sm:$0xf0]  ;;  %v3710_v24 = vld [vmem:[#allocation2 + $0x698] sm:$0xf] }
  0x74   :  { %2014 = vmatpush.bf16.msra.mxu3 %v3851_v49  ;;  %v3543_v49 = vor.u32 %v4385_v42, %v3542_v41  ;;  %v3255_v41 = vor.u32 %v4313_v28, %v3254_v26  ;;  %v4304_v42 = vld [vmem:[#allocation2 + $0x2dc] sm:$0xf]  ;;  %v3043_v47 = vor.u32 %v4256_v37, %v3040_v39  ;;  %v4427_v25 = vld [vmem:[#allocation2 + $0x6ac] sm:$0xf0]  ;;  %v3902_v26 = vld [vmem:[#allocation2 + $0x818] sm:$0xf] }
  0x75   :  { %1976 = vmatpush.bf16.msra.mxu0 %v3251_v56  ;;  %v3135_v56 = vor.u32 %v4283_v50, %v3134_v48  ;;  %v3782_v48 = vld [vmem:[#allocation2 + $0x728] sm:$0xf]  ;;  %v4475_v28 = vld [vmem:[#allocation2 + $0x82c] sm:$0xf0]  ;;  %v4421_v39 = vld [vmem:[#allocation2 + $0x67c] sm:$0xf0] }
  0x76   :  { %1989 = vmatpush.bf16.msra.mxu1 %v3443_v60  ;;  %v3110_v60 = vld [vmem:[#allocation2 + $0x1e8] sm:$0xf] }
  0x77   :  { %2002 = vmatpush.bf16.msra.mxu2 %v3635_v61  ;;  %v3519_v61 = vor.u32 %v4379_v54, %v3518_v53  ;;  %v3111_v4 = vor.u32 %v4277_v62, %v3110_v60  ;;  %v3974_v50 = vld [vmem:[#allocation2 + $0x8a8] sm:$0xf]  ;;  %v4250_v53 = vld [vmem:[#allocation2 + $0x12c] sm:$0xf]  ;;  %v3016_v54 = vld [vmem:[#allocation2 + $0x140] sm:$0xf0] }
  0x78   :  { %2015 = vmatpush.bf16.msra.mxu3 %v3827_v0  ;;  %1977 = vmatmul.bf16.vlgmr.msra.gmra.mxu0 %v4771_v18  ;;  %v4325_v0 = vld [vmem:[#allocation2 + $0x37c] sm:$0xf0]  ;;  %v3758_v60 = vld [vmem:[#allocation2 + $0x6f8] sm:$0xf]  ;;  %v3686_v37 = vld [vmem:[#allocation2 + $0x668] sm:$0xf] }
  0x79   :  { %2021 = vmatpush.bf16.msrb.mxu0 %v3039_v1  ;;  %1990 = vmatmul.bf16.vlgmr.msra.gmra.mxu1 %v4775_v20  ;;  %v3494_v1 = vld [vmem:[#allocation2 + $0x4e8] sm:$0xf]  ;;  %v3303_v5 = vor.u32 %v4325_v0, %v3302_v63  ;;  %v3950_v62 = vld [vmem:[#allocation2 + $0x878] sm:$0xf]  ;;  %v4487_v0 = vld [vmem:[#allocation2 + $0x88c] sm:$0xf0] }
  0x7a   :  { %2034 = vmatpush.bf16.msrb.mxu1 %v3231_v2  ;;  %2003 = vmatmul.bf16.vlgmr.msra.gmra.mxu2 %v4786_v35  ;;  %v4373_v2 = vld [vmem:[#allocation2 + $0x4fc] sm:$0xf0] }
  0x7b   :  { %2047 = vmatpush.bf16.msrb.mxu2 %v3423_v3  ;;  %2016 = vmatmul.bf16.vlgmr.msra.gmra.mxu3 %v4788_v38  ;;  %v2919_v3 = vor.u32 %v4229_v59, %v2918_v58  ;;  %v3495_v9 = vor.u32 %v4373_v2, %v3494_v1  ;;  %v3975_v58 = vor.u32 %v4493_v52, %v3974_v50  ;;  %v4244_v1 = vld [vmem:[#allocation2 + $0xfc] sm:$0xf]  ;;  %v2992_v2 = vld [vmem:[#allocation2 + $0x110] sm:$0xf0]  ;;  %v3662_v50 = vld [vmem:[#allocation2 + $0x638] sm:$0xf] }
  0x7c   :  { %2060 = vmatpush.bf16.msrb.mxu3 %v3615_v7  ;;  %v4223_v7 = vld [vmem:[#allocation2 + $0x4c] sm:$0xf0]  ;;  %v3019_v59 = vor.u32 %v4250_v53, %v3016_v54  ;;  %v3854_v52 = vld [vmem:[#allocation2 + $0x7b8] sm:$0xf] }
  0x7d   :  { %2022 = vmatpush.bf16.msrb.mxu0 %v3015_v13  ;;  %v3470_v13 = vld [vmem:[#allocation2 + $0x4b8] sm:$0xf]  ;;  %v4463_v54 = vld [vmem:[#allocation2 + $0x7cc] sm:$0xf0] }
  0x7e   :  { %2035 = vmatpush.bf16.msrb.mxu1 %v3207_v14  ;;  %v4367_v14 = vld [vmem:[#allocation2 + $0x4cc] sm:$0xf0] }
  0x7f   :  { %2048 = vmatpush.bf16.msrb.mxu2 %v3399_v15  ;;  %v2895_v15 = vor.u32 %v4223_v7, %v2894_v6  ;;  %v3471_v27 = vor.u32 %v4367_v14, %v3470_v13  ;;  %v3951_v6 = vor.u32 %v4487_v0, %v3950_v62  ;;  %v2995_v7 = vor.u32 %v4244_v1, %v2992_v2  ;;  %v4238_v13 = vld [vmem:[#allocation2 + $0xcc] sm:$0xf]  ;;  %v2968_v14 = vld [vmem:[#allocation2 + $0xe0] sm:$0xf0]  ;;  %v3830_v0 = vld [vmem:[#allocation2 + $0x788] sm:$0xf] }
  0x80   :  { %2061 = vmatpush.bf16.msrb.mxu3 %v3591_v23  ;;  %v3279_v23 = vor.u32 %v4319_v12, %v3278_v11  ;;  %v4481_v12 = vld [vmem:[#allocation2 + $0x85c] sm:$0xf0]  ;;  %v3855_v62 = vor.u32 %v4463_v54, %v3854_v52  ;;  %v4214_v2 = vld [vmem:[#allocation2 + $0xc] sm:$0xf] }
  0x81   :  { %2023 = vmatpush.bf16.msrb.mxu0 %v2991_v29  ;;  %v3446_v29 = vld [vmem:[#allocation2 + $0x488] sm:$0xf]  ;;  %v4457_v1 = vld [vmem:[#allocation2 + $0x79c] sm:$0xf0]  ;;  %v4334_v52 = vld [vmem:[#allocation2 + $0x3cc] sm:$0xf] }
  0x82   :  { %2036 = vmatpush.bf16.msrb.mxu1 %v3183_v30  ;;  %v4361_v30 = vld [vmem:[#allocation2 + $0x49c] sm:$0xf0]  ;;  %v4382_v54 = vld [vmem:[#allocation2 + $0x54c] sm:$0xf] }
  0x83   :  { %2049 = vmatpush.bf16.msrb.mxu2 %v3375_v31  ;;  %v3806_v31 = vld [vmem:[#allocation2 + $0x758] sm:$0xf] }
  0x84   :  { %2062 = vmatpush.bf16.msrb.mxu3 %v3567_v36  ;;  %v4499_v36 = vld [vmem:[#allocation2 + $0x8ec] sm:$0xf0] }
  0x85   :  { %2024 = vmatpush.bf16.msrb.mxu0 %v2967_v43  ;;  %v3232_v43 = vld [vmem:[#allocation2 + $0x2f0] sm:$0xf0]  ;;  %v3999_v46 = vor.u32 %v4499_v36, %v3998_v33  ;;  %v3711_v33 = vor.u32 %v4427_v25, %v3710_v24 }
  0x86   :  { %2037 = vmatpush.bf16.msrb.mxu1 %v3159_v44  ;;  %v3447_v44 = vor.u32 %v4361_v30, %v3446_v29  ;;  %v3235_v51 = vor.u32 %v4304_v42, %v3232_v43  ;;  %v4232_v29 = vld [vmem:[#allocation2 + $0x9c] sm:$0xf]  ;;  %v2944_v30 = vld [vmem:[#allocation2 + $0xb0] sm:$0xf0]  ;;  %v4469_v42 = vld [vmem:[#allocation2 + $0x7fc] sm:$0xf0] }
  0x87   :  { %2050 = vmatpush.bf16.msrb.mxu2 %v3351_v45  ;;  %v3807_v45 = vor.u32 %v4451_v32, %v3806_v31  ;;  %v4280_v31 = vld [vmem:[#allocation2 + $0x21c] sm:$0xf]  ;;  %v3136_v32 = vld [vmem:[#allocation2 + $0x230] sm:$0xf0]  ;;  %v2947_v36 = vor.u32 %v4232_v29, %v2944_v30  ;;  %v4226_v43 = vld [vmem:[#allocation2 + $0x6c] sm:$0xf] }
  0x88   :  { %2063 = vmatpush.bf16.msrb.mxu3 %v3543_v49  ;;  %v4445_v49 = vld [vmem:[#allocation2 + $0x73c] sm:$0xf0]  ;;  %v3592_v30 = vld [vmem:[#allocation2 + $0x5c0] sm:$0xf0] }
  0x89   :  { %2025 = vmatpush.bf16.msrb.mxu0 %v2943_v55  ;;  %v4298_v55 = vld [vmem:[#allocation2 + $0x2ac] sm:$0xf] }
  0x8a   :  { %2038 = vmatpush.bf16.msrb.mxu1 %v3135_v56  ;;  %v3208_v56 = vld [vmem:[#allocation2 + $0x2c0] sm:$0xf0] }
  0x8b   :  { %2051 = vmatpush.bf16.msrb.mxu2 %v3327_v57  ;;  %v3783_v57 = vor.u32 %v4445_v49, %v3782_v48  ;;  %v3211_v63 = vor.u32 %v4298_v55, %v3208_v56  ;;  %v4220_v55 = vld [vmem:[#allocation2 + $0x3c] sm:$0xf]  ;;  %v2896_v56 = vld [vmem:[#allocation2 + $0x50] sm:$0xf0] }
  0x8c   :  { %2064 = vmatpush.bf16.msrb.mxu3 %v3519_v61  ;;  %v4439_v61 = vld [vmem:[#allocation2 + $0x70c] sm:$0xf0] }
  0x8d   :  { %2026 = vmatpush.bf16.msrb.mxu0 %v2919_v3  ;;  %v4292_v3 = vld [vmem:[#allocation2 + $0x27c] sm:$0xf] }
  0x8e   :  { %2039 = vmatpush.bf16.msrb.mxu1 %v3111_v4  ;;  %v3184_v4 = vld [vmem:[#allocation2 + $0x290] sm:$0xf0] }
  0x8f   :  { %2052 = vmatpush.bf16.msrb.mxu2 %v3303_v5  ;;  %v3759_v5 = vor.u32 %v4439_v61, %v3758_v60  ;;  %v3187_v11 = vor.u32 %v4292_v3, %v3184_v4  ;;  %v3638_v60 = vld [vmem:[#allocation2 + $0x608] sm:$0xf]  ;;  %v4409_v61 = vld [vmem:[#allocation2 + $0x61c] sm:$0xf0]  ;;  %v2872_v4 = vld [vmem:[#allocation2 + $0x20] sm:$0xf0] }
  0x90   :  { %2065 = vmatpush.bf16.msrb.mxu3 %v3495_v9  ;;  %v4433_v9 = vld [vmem:[#allocation2 + $0x6dc] sm:$0xf0] }
  0x91   :  { %2027 = vmatpush.bf16.msrb.mxu0 %v2895_v15  ;;  %v4286_v15 = vld [vmem:[#allocation2 + $0x24c] sm:$0xf]  ;;  %v3735_v17 = vor.u32 %v4433_v9, %v3734_v8  ;;  %v3424_v8 = vld [vmem:[#allocation2 + $0x470] sm:$0xf0]  ;;  %v4400_v9 = vld [vmem:[#allocation2 + $0x5dc] sm:$0xf] }
  0x92   :  { %2040 = vmatpush.bf16.msrb.mxu1 %v3087_v21  ;;  %v3927_v21 = vor.u32 %v4481_v12, %v3926_v10  ;;  %v3639_v10 = vor.u32 %v4409_v61, %v3638_v60  ;;  %v4448_v12 = vld [vmem:[#allocation2 + $0x75c] sm:$0xf]  ;;  %v3928_v60 = vld [vmem:[#allocation2 + $0x860] sm:$0xf0] }
  0x93   :  { %2053 = vmatpush.bf16.msrb.mxu2 %v3279_v23  ;;  %v2971_v23 = vor.u32 %v4238_v13, %v2968_v14  ;;  %v3808_v13 = vld [vmem:[#allocation2 + $0x770] sm:$0xf0]  ;;  %v3831_v14 = vor.u32 %v4457_v1, %v3830_v0 }
  0x94   :  { %2066 = vmatpush.bf16.msrb.mxu3 %v3471_v27  ;;  %v3163_v27 = vor.u32 %v4286_v15, %v3160_v16  ;;  %v2875_v15 = vor.u32 %v4214_v2, %v2872_v4  ;;  %v4496_v16 = vld [vmem:[#allocation2 + $0x8dc] sm:$0xf]  ;;  %v3811_v25 = vor.u32 %v4448_v12, %v3808_v13  ;;  %v3328_v1 = vld [vmem:[#allocation2 + $0x3b0] sm:$0xf0] }
  0x95   :  { %2028 = vmatpush.bf16.msrb.mxu0 %v2871_v34  ;;  %v3903_v34 = vor.u32 %v4475_v28, %v3902_v26  ;;  %v4346_v26 = vld [vmem:[#allocation2 + $0x42c] sm:$0xf]  ;;  %v4376_v2 = vld [vmem:[#allocation2 + $0x51c] sm:$0xf] }
  0x96   :  { %2041 = vmatpush.bf16.msrb.mxu1 %v3063_v40  ;;  %v3878_v40 = vld [vmem:[#allocation2 + $0x7e8] sm:$0xf]  ;;  %v4394_v28 = vld [vmem:[#allocation2 + $0x5ac] sm:$0xf] }
  0x97   :  { %2054 = vmatpush.bf16.msrb.mxu2 %v3255_v41  ;;  %v3139_v41 = vor.u32 %v4280_v31, %v3136_v32  ;;  %v3879_v48 = vor.u32 %v4469_v42, %v3878_v40  ;;  %v4442_v31 = vld [vmem:[#allocation2 + $0x72c] sm:$0xf]  ;;  %v3784_v32 = vld [vmem:[#allocation2 + $0x740] sm:$0xf0]  ;;  %v4340_v40 = vld [vmem:[#allocation2 + $0x3fc] sm:$0xf] }
  0x98   :  { %2067 = vmatpush.bf16.msrb.mxu3 %v3447_v44  ;;  %2029 = vmatmul.bf16.vlgmr.msrb.gmra.mxu0 %v4773_v19  ;;  %v2920_v44 = vld [vmem:[#allocation2 + $0x80] sm:$0xf0]  ;;  %v4388_v42 = vld [vmem:[#allocation2 + $0x57c] sm:$0xf] }
  0x99   :  { %2073 = vmatpush.bf16.msra.mxu0 %v3807_v45  ;;  %2042 = vmatmul.bf16.vlgmr.msrb.gmra.mxu1 %v4777_v22  ;;  %v4274_v45 = vld [vmem:[#allocation2 + $0x1ec] sm:$0xf]  ;;  %v2923_v49 = vor.u32 %v4226_v43, %v2920_v44  ;;  %v3568_v44 = vld [vmem:[#allocation2 + $0x590] sm:$0xf0] }
  0x9a   :  { %2086 = vmatpush.bf16.msra.mxu1 %v3999_v46  ;;  %2055 = vmatmul.bf16.vlgmr.msrb.gmra.mxu2 %v4771_v18  ;;  %v3112_v46 = vld [vmem:[#allocation2 + $0x200] sm:$0xf0] }
  0x9b   :  { %2099 = vmatpush.bf16.msra.mxu2 %v3043_v47  ;;  %2068 = vmatmul.bf16.vlgmr.msrb.gmra.mxu3 %v4775_v20  ;;  %v3687_v47 = vor.u32 %v4421_v39, %v3686_v37  ;;  %v3115_v53 = vor.u32 %v4274_v45, %v3112_v46  ;;  %v3595_v37 = vor.u32 %v4394_v28, %v3592_v30  ;;  %v4436_v45 = vld [vmem:[#allocation2 + $0x6fc] sm:$0xf]  ;;  %v3760_v46 = vld [vmem:[#allocation2 + $0x710] sm:$0xf0] }
  0x9c   :  { %2112 = vmatpush.bf16.msra.mxu3 %v3235_v51  ;;  %v4415_v51 = vld [vmem:[#allocation2 + $0x64c] sm:$0xf0]  ;;  %v3787_v39 = vor.u32 %v4442_v31, %v3784_v32  ;;  %v4316_v31 = vld [vmem:[#allocation2 + $0x33c] sm:$0xf]  ;;  %v3280_v32 = vld [vmem:[#allocation2 + $0x350] sm:$0xf0] }
  0x9d   :  { %2074 = vmatpush.bf16.msra.mxu0 %v3783_v57  ;;  %v4268_v57 = vld [vmem:[#allocation2 + $0x1bc] sm:$0xf] }
  0x9e   :  { %2087 = vmatpush.bf16.msra.mxu1 %v3975_v58  ;;  %v3088_v58 = vld [vmem:[#allocation2 + $0x1d0] sm:$0xf0] }
  0x9f   :  { %2100 = vmatpush.bf16.msra.mxu2 %v3019_v59  ;;  %v3663_v59 = vor.u32 %v4415_v51, %v3662_v50  ;;  %v3091_v3 = vor.u32 %v4268_v57, %v3088_v58  ;;  %v3571_v50 = vor.u32 %v4388_v42, %v3568_v44  ;;  %v3763_v51 = vor.u32 %v4436_v45, %v3760_v46  ;;  %v4430_v57 = vld [vmem:[#allocation2 + $0x6cc] sm:$0xf]  ;;  %v3736_v58 = vld [vmem:[#allocation2 + $0x6e0] sm:$0xf0]  ;;  %v4460_v42 = vld [vmem:[#allocation2 + $0x7bc] sm:$0xf] }
  0xa0   :  { %2113 = vmatpush.bf16.msra.mxu3 %v3211_v63  ;;  %v2899_v63 = vor.u32 %v4220_v55, %v2896_v56  ;;  %v3544_v56 = vld [vmem:[#allocation2 + $0x560] sm:$0xf0]  ;;  %v3739_v0 = vor.u32 %v4430_v57, %v3736_v58  ;;  %v3283_v45 = vor.u32 %v4316_v31, %v3280_v32  ;;  %v4310_v46 = vld [vmem:[#allocation2 + $0x30c] sm:$0xf] }
  0xa1   :  { %2075 = vmatpush.bf16.msra.mxu0 %v3759_v5  ;;  %v4262_v5 = vld [vmem:[#allocation2 + $0x18c] sm:$0xf]  ;;  %v3832_v57 = vld [vmem:[#allocation2 + $0x7a0] sm:$0xf0] }
  0xa2   :  { %2088 = vmatpush.bf16.msra.mxu1 %v3951_v6  ;;  %v3064_v6 = vld [vmem:[#allocation2 + $0x1a0] sm:$0xf0] }
  0xa3   :  { %2101 = vmatpush.bf16.msra.mxu2 %v2995_v7  ;;  %v4352_v7 = vld [vmem:[#allocation2 + $0x45c] sm:$0xf] }
  0xa4   :  { %2114 = vmatpush.bf16.msra.mxu3 %v3187_v11  ;;  %v3616_v11 = vld [vmem:[#allocation2 + $0x5f0] sm:$0xf0] }
  0xa5   :  { %2076 = vmatpush.bf16.msra.mxu0 %v3735_v17  ;;  %v4000_v17 = vld [vmem:[#allocation2 + $0x8f0] sm:$0xf0]  ;;  %v3619_v24 = vor.u32 %v4400_v9, %v3616_v11  ;;  %v4322_v11 = vld [vmem:[#allocation2 + $0x36c] sm:$0xf] }
  0xa6   :  { %2089 = vmatpush.bf16.msra.mxu1 %v3927_v21  ;;  %v3067_v21 = vor.u32 %v4262_v5, %v3064_v6  ;;  %v4003_v29 = vor.u32 %v4496_v16, %v4000_v17  ;;  %v4424_v5 = vld [vmem:[#allocation2 + $0x69c] sm:$0xf]  ;;  %v3712_v6 = vld [vmem:[#allocation2 + $0x6b0] sm:$0xf0] }
  0xa7   :  { %2102 = vmatpush.bf16.msra.mxu2 %v2971_v23  ;;  %v3427_v23 = vor.u32 %v4352_v7, %v3424_v8  ;;  %v4806_v7 = vld [vmem:[#allocation4] sm:$0x3f]  ;;  %v4472_v8 = vld [vmem:[#allocation2 + $0x81c] sm:$0xf]  ;;  %v3904_v9 = vld [vmem:[#allocation2 + $0x830] sm:$0xf0]  ;;  %v3715_v13 = vor.u32 %v4424_v5, %v3712_v6 }
  0xa8   :  { %2115 = vmatpush.bf16.msra.mxu3 %v3163_v27  ;;  %v3400_v27 = vld [vmem:[#allocation2 + $0x440] sm:$0xf0]  ;;  %v392_v16 = vperm.slane %v4806_v7, 0  ;;  %v3907_v17 = vor.u32 %v4472_v8, %v3904_v9  ;;  %v3622_v8 = vld [vmem:[#allocation2 + $0x5e0] sm:$0xf] }
  0xa9   :  { %2077 = vmatpush.bf16.msra.mxu0 %v3711_v33  ;;  %v4490_v33 = vld [vmem:[#allocation2 + $0x8ac] sm:$0xf]  ;;  %v4404_v9 = vld [vmem:[#allocation2 + $0x5f4] sm:$0xf0] }
  0xaa   :  { %2090 = vmatpush.bf16.msra.mxu1 %v3903_v34  ;;  %v3976_v34 = vld [vmem:[#allocation2 + $0x8c0] sm:$0xf0] }
  0xab   :  { %2103 = vmatpush.bf16.msra.mxu2 %v2947_v36  ;;  %v3403_v36 = vor.u32 %v4346_v26, %v3400_v27  ;;  %v3979_v43 = vor.u32 %v4490_v33, %v3976_v34  ;;  %v3880_v26 = vld [vmem:[#allocation2 + $0x800] sm:$0xf0]  ;;  %v4364_v33 = vld [vmem:[#allocation2 + $0x4bc] sm:$0xf] }
  0xac   :  { %2116 = vmatpush.bf16.msra.mxu3 %v3139_v41  ;;  %v3376_v41 = vld [vmem:[#allocation2 + $0x410] sm:$0xf0] }
  0xad   :  { %2078 = vmatpush.bf16.msra.mxu0 %v3687_v47  ;;  %v4484_v47 = vld [vmem:[#allocation2 + $0x87c] sm:$0xf] }
  0xae   :  { %2091 = vmatpush.bf16.msra.mxu1 %v3879_v48  ;;  %v3952_v48 = vld [vmem:[#allocation2 + $0x890] sm:$0xf0] }
  0xaf   :  { %2104 = vmatpush.bf16.msra.mxu2 %v2923_v49  ;;  %v3379_v49 = vor.u32 %v4340_v40, %v3376_v41  ;;  %v3955_v55 = vor.u32 %v4484_v47, %v3952_v48  ;;  %v4412_v40 = vld [vmem:[#allocation2 + $0x63c] sm:$0xf]  ;;  %v3664_v41 = vld [vmem:[#allocation2 + $0x650] sm:$0xf0]  ;;  %v3256_v47 = vld [vmem:[#allocation2 + $0x320] sm:$0xf0] }
  0xb0   :  { %2117 = vmatpush.bf16.msra.mxu3 %v3115_v53  ;;  %v3352_v53 = vld [vmem:[#allocation2 + $0x3e0] sm:$0xf0] }
  0xb1   :  { %2079 = vmatpush.bf16.msra.mxu0 %v3663_v59  ;;  %v4478_v59 = vld [vmem:[#allocation2 + $0x84c] sm:$0xf]  ;;  %v3355_v61 = vor.u32 %v4334_v52, %v3352_v53 }
  0xb2   :  { %2092 = vmatpush.bf16.msra.mxu1 %v3855_v62  ;;  %v4328_v62 = vld [vmem:[#allocation2 + $0x39c] sm:$0xf]  ;;  %v3931_v4 = vor.u32 %v4478_v59, %v3928_v60  ;;  %v4406_v52 = vld [vmem:[#allocation2 + $0x60c] sm:$0xf]  ;;  %v3046_v60 = vld [vmem:[#allocation2 + $0x160] sm:$0xf] }
  0xb3   :  { %2105 = vmatpush.bf16.msra.mxu2 %v2899_v63  ;;  %v3547_v63 = vor.u32 %v4382_v54, %v3544_v56  ;;  %v4454_v56 = vld [vmem:[#allocation2 + $0x78c] sm:$0xf] }
  0xb4   :  { %2118 = vmatpush.bf16.msra.mxu3 %v3091_v3  ;;  %v3520_v3 = vld [vmem:[#allocation2 + $0x530] sm:$0xf0] }
  0xb5   :  { %2080 = vmatpush.bf16.msra.mxu0 %v3639_v10  ;;  %v3331_v10 = vor.u32 %v4328_v62, %v3328_v1  ;;  %v3523_v12 = vor.u32 %v4376_v2, %v3520_v3  ;;  %v1874_v28 = vpop.f32.mrf.mxu0  ;;  %v3238_v62 = vld [vmem:[#allocation2 + $0x2e0] sm:$0xf]  ;;  %v4356_v2 = vld [vmem:[#allocation2 + $0x474] sm:$0xf0] }
  0xb6   :  { %2093 = vmatpush.bf16.msra.mxu1 %v3831_v14  ;;  %v3304_v14 = vld [vmem:[#allocation2 + $0x380] sm:$0xf0]  ;;  %v1875_v34 = vadd.f32 %v1874_v28, %v392_v16  ;;  %v3430_v1 = vld [vmem:[#allocation2 + $0x460] sm:$0xf]  ;;  %v4254_v16 = vld [vmem:[#allocation2 + $0x144] sm:$0xf0] }
  0xb7   :  { %2106 = vmatpush.bf16.msra.mxu2 %v2875_v15  ;;  %v4370_v15 = vld [vmem:[#allocation2 + $0x4ec] sm:$0xf]  ;;  %v3307_v27 = vor.u32 %v4322_v11, %v3304_v14  ;;  %v3835_v11 = vor.u32 %v4454_v56, %v3832_v57  ;;  %v3431_v14 = vor.u32 %v4356_v2, %v3430_v1  ;;  %v4284_v2 = vld [vmem:[#allocation2 + $0x234] sm:$0xf0] }
  0xb8   :  { %2119 = vmatpush.bf16.msra.mxu3 %v3067_v21  ;;  %2081 = vmatmul.bf16.vlgmr.msra.gmra.mxu0 %v4786_v35  ;;  %v3496_v21 = vld [vmem:[#allocation2 + $0x500] sm:$0xf0] }
  0xb9   :  { %2125 = vmatpush.bf16.msrb.mxu0 %v3427_v23  ;;  %2094 = vmatmul.bf16.vlgmr.msra.gmra.mxu1 %v4788_v38  ;;  %v4418_v23 = vld [vmem:[#allocation2 + $0x66c] sm:$0xf] }
  0xba   :  { %2138 = vmatpush.bf16.msrb.mxu1 %v3619_v24  ;;  %2107 = vmatmul.bf16.vlgmr.msra.gmra.mxu2 %v4773_v19  ;;  %v3688_v24 = vld [vmem:[#allocation2 + $0x680] sm:$0xf0] }
  0xbb   :  { %2151 = vmatpush.bf16.msrb.mxu2 %v3811_v25  ;;  %2120 = vmatmul.bf16.vlgmr.msra.gmra.mxu3 %v4777_v22  ;;  %v4466_v25 = vld [vmem:[#allocation2 + $0x7ec] sm:$0xf]  ;;  %v3691_v30 = vor.u32 %v4418_v23, %v3688_v24  ;;  %v4302_v23 = vld [vmem:[#allocation2 + $0x2c4] sm:$0xf0]  ;;  %v3406_v24 = vld [vmem:[#allocation2 + $0x430] sm:$0xf] }
  0xbc   :  { %2164 = vmatpush.bf16.msrb.mxu3 %v4003_v29  ;;  %v3499_v29 = vor.u32 %v4370_v15, %v3496_v21  ;;  %v3022_v15 = vld [vmem:[#allocation2 + $0x130] sm:$0xf]  ;;  %v3623_v21 = vor.u32 %v4404_v9, %v3622_v8  ;;  %v3526_v8 = vld [vmem:[#allocation2 + $0x520] sm:$0xf]  ;;  %v4380_v9 = vld [vmem:[#allocation2 + $0x534] sm:$0xf0] }
  0xbd   :  { %2126 = vmatpush.bf16.msrb.mxu0 %v3403_v36  ;;  %v1887_v36 = vpop.f32.mrf.mxu1  ;;  %v1900_v53 = vpop.f32.mrf.mxu2 }
  0xbe   :  { %2139 = vmatpush.bf16.msrb.mxu1 %v3595_v37  ;;  %v3883_v37 = vor.u32 %v4466_v25, %v3880_v26  ;;  %v1888_v44 = vadd.f32 %v1887_v36, %v1875_v34  ;;  %v1913_v59 = vpop.f32.mrf.mxu3  ;;  %v4350_v25 = vld [vmem:[#allocation2 + $0x444] sm:$0xf0]  ;;  %v3598_v26 = vld [vmem:[#allocation2 + $0x5b0] sm:$0xf]  ;;  %v4248_v34 = vld [vmem:[#allocation2 + $0x114] sm:$0xf0] }
  0xbf   :  { %2152 = vmatpush.bf16.msrb.mxu2 %v3787_v39  ;;  %v3472_v39 = vld [vmem:[#allocation2 + $0x4d0] sm:$0xf0]  ;;  %v3407_v32 = vor.u32 %v4350_v25, %v3406_v24  ;;  %v3190_v36 = vld [vmem:[#allocation2 + $0x280] sm:$0xf]  ;;  %v3502_v25 = vld [vmem:[#allocation2 + $0x4f0] sm:$0xf] }
  0xc0   :  { %2165 = vmatpush.bf16.msrb.mxu3 %v3979_v43  ;;  %v3856_v43 = vld [vmem:[#allocation2 + $0x7d0] sm:$0xf0]  ;;  %v3475_v48 = vor.u32 %v4364_v33, %v3472_v39  ;;  %v1901_v58 = vadd.f32 %v1900_v53, %v1888_v44  ;;  %v2998_v33 = vld [vmem:[#allocation2 + $0x100] sm:$0xf]  ;;  %v4296_v39 = vld [vmem:[#allocation2 + $0x294] sm:$0xf0] }
  0xc1   :  { %2127 = vmatpush.bf16.msrb.mxu0 %v3379_v49  ;;  %v3667_v49 = vor.u32 %v4412_v40, %v3664_v41  ;;  %v3859_v54 = vor.u32 %v4460_v42, %v3856_v43  ;;  %v3382_v40 = vld [vmem:[#allocation2 + $0x400] sm:$0xf]  ;;  %v4344_v41 = vld [vmem:[#allocation2 + $0x414] sm:$0xf0]  ;;  %v2999_v44 = vor.u32 %v4248_v34, %v2998_v33  ;;  %v4338_v53 = vld [vmem:[#allocation2 + $0x3e4] sm:$0xf0] }
  0xc2   :  { %2140 = vmatpush.bf16.msrb.mxu1 %v3571_v50  ;;  %v4358_v50 = vld [vmem:[#allocation2 + $0x48c] sm:$0xf]  ;;  %v4809_v3 = vadd.f32 %v1913_v59, %v1901_v58  ;;  %v3574_v42 = vld [vmem:[#allocation2 + $0x580] sm:$0xf]  ;;  %v4392_v43 = vld [vmem:[#allocation2 + $0x594] sm:$0xf0] }
  0xc3   :  { %2153 = vmatpush.bf16.msrb.mxu2 %v3763_v51  ;;  %v3448_v51 = vld [vmem:[#allocation2 + $0x4a0] sm:$0xf0]  ;;  %v2902_v34 = vld [vmem:[#allocation2 + $0x40] sm:$0xf] }
  0xc4   :  { %2166 = vmatpush.bf16.msrb.mxu3 %v3955_v55  ;;  %v3640_v55 = vld [vmem:[#allocation2 + $0x620] sm:$0xf0]  ;;  %v3451_v5 = vor.u32 %v4358_v50, %v3448_v51  ;;  %v3575_v50 = vor.u32 %v4392_v43, %v3574_v42  ;;  %v4290_v51 = vld [vmem:[#allocation2 + $0x264] sm:$0xf0]  ;;  %v3286_v42 = vld [vmem:[#allocation2 + $0x340] sm:$0xf] }
  0xc5   :  { %2128 = vmatpush.bf16.msrb.mxu0 %v3355_v61  ;;  %v4260_v61 = vld [vmem:[#allocation2 + $0x174] sm:$0xf0]  ;;  %v3643_v6 = vor.u32 %v4406_v52, %v3640_v55  ;;  %v1902_v28 = vpop.f32.mrf.mxu2  ;;  %v3358_v52 = vld [vmem:[#allocation2 + $0x3d0] sm:$0xf]  ;;  %v4386_v55 = vld [vmem:[#allocation2 + $0x564] sm:$0xf0] }
  0xc6   :  { %2141 = vmatpush.bf16.msrb.mxu1 %v3547_v63  ;;  %v3259_v63 = vor.u32 %v4310_v46, %v3256_v47  ;;  %v3383_v46 = vor.u32 %v4344_v41, %v3382_v40  ;;  %v2974_v47 = vld [vmem:[#allocation2 + $0xd0] sm:$0xf]  ;;  %v4272_v41 = vld [vmem:[#allocation2 + $0x1d4] sm:$0xf0] }
  0xc7   :  { %2154 = vmatpush.bf16.msrb.mxu2 %v3739_v0  ;;  %v4308_v0 = vld [vmem:[#allocation2 + $0x2f4] sm:$0xf0] }
  0xc8   :  { %2167 = vmatpush.bf16.msrb.mxu3 %v3931_v4  ;;  %v1876_v4 = vpop.f32.mrf.mxu0  ;;  %v4320_v43 = vld [vmem:[#allocation2 + $0x354] sm:$0xf0] }
  0xc9   :  { %2129 = vmatpush.bf16.msrb.mxu0 %v3331_v10  ;;  %v1889_v10 = vpop.f32.mrf.mxu1  ;;  %v3334_v4 = vld [vmem:[#allocation2 + $0x3a0] sm:$0xf] }
  0xca   :  { %2142 = vmatpush.bf16.msrb.mxu1 %v3523_v12  ;;  %v3047_v12 = vor.u32 %v4260_v61, %v3046_v60  ;;  %v3359_v61 = vor.u32 %v4338_v53, %v3358_v52  ;;  %v393_v10 = vperm.slane %v4806_v7, 1  ;;  %v4266_v52 = vld [vmem:[#allocation2 + $0x1a4] sm:$0xf0]  ;;  %v3262_v53 = vld [vmem:[#allocation2 + $0x310] sm:$0xf] }
  0xcb   :  { %2155 = vmatpush.bf16.msrb.mxu2 %v3715_v13  ;;  %v3239_v13 = vor.u32 %v4308_v0, %v3238_v62  ;;  %v2950_v62 = vld [vmem:[#allocation2 + $0xa0] sm:$0xf] }
  0xcc   :  { %2168 = vmatpush.bf16.msrb.mxu3 %v3907_v17  ;;  %v3214_v17 = vld [vmem:[#allocation2 + $0x2b0] sm:$0xf]  ;;  %v3142_v0 = vld [vmem:[#allocation2 + $0x220] sm:$0xf] }
  0xcd   :  { %2130 = vmatpush.bf16.msrb.mxu0 %v3307_v27  ;;  %v4398_v27 = vld [vmem:[#allocation2 + $0x5c4] sm:$0xf0]  ;;  %v3215_v31 = vor.u32 %v4302_v23, %v3214_v17 }
  0xce   :  { %2143 = vmatpush.bf16.msrb.mxu1 %v3499_v29  ;;  %v3023_v29 = vor.u32 %v4254_v16, %v3022_v15  ;;  %v3118_v15 = vld [vmem:[#allocation2 + $0x1f0] sm:$0xf]  ;;  %v3527_v16 = vor.u32 %v4380_v9, %v3526_v8  ;;  %v4278_v17 = vld [vmem:[#allocation2 + $0x204] sm:$0xf0]  ;;  %v4305_v8 = vld [vmem:[#allocation2 + $0x2e4] sm:$0xf] }
  0xcf   :  { %2156 = vmatpush.bf16.msrb.mxu2 %v3691_v30  ;;  %v1915_v30 = vpop.f32.mrf.mxu3  ;;  %v4326_v23 = vld [vmem:[#allocation2 + $0x384] sm:$0xf0]  ;;  %v3240_v9 = vld [vmem:[#allocation2 + $0x2f8] sm:$0xf0] }
  0xd0   :  { %2169 = vmatpush.bf16.msrb.mxu3 %v3883_v37  ;;  %v3599_v37 = vor.u32 %v4398_v27, %v3598_v26  ;;  %v4374_v26 = vld [vmem:[#allocation2 + $0x504] sm:$0xf0] }
  0xd1   :  { %2131 = vmatpush.bf16.msrb.mxu0 %v3283_v45  ;;  %v3191_v45 = vor.u32 %v4296_v39, %v3190_v36  ;;  %v4224_v36 = vld [vmem:[#allocation2 + $0x54] sm:$0xf0]  ;;  %v3503_v40 = vor.u32 %v4374_v26, %v3502_v25  ;;  %v3216_v25 = vld [vmem:[#allocation2 + $0x2c8] sm:$0xf0] }
  0xd2   :  { %2144 = vmatpush.bf16.msrb.mxu1 %v3475_v48  ;;  %v4242_v48 = vld [vmem:[#allocation2 + $0xe4] sm:$0xf0] }
  0xd3   :  { %2157 = vmatpush.bf16.msrb.mxu2 %v3667_v49  ;;  %v3166_v49 = vld [vmem:[#allocation2 + $0x250] sm:$0xf]  ;;  %v2975_v57 = vor.u32 %v4242_v48, %v2974_v47  ;;  %v4218_v48 = vld [vmem:[#allocation2 + $0x24] sm:$0xf0] }
  0xd4   :  { %2170 = vmatpush.bf16.msrb.mxu3 %v3859_v54  ;;  %v3550_v54 = vld [vmem:[#allocation2 + $0x550] sm:$0xf]  ;;  %v3167_v60 = vor.u32 %v4290_v51, %v3166_v49 }
  0xd5   :  { %2132 = vmatpush.bf16.msrb.mxu0 %v3259_v63  ;;  %v1926_v56 = vpop.f32.mrf.mxu0  ;;  %v4236_v63 = vld [vmem:[#allocation2 + $0xb4] sm:$0xf0]  ;;  %v3551_v1 = vor.u32 %v4386_v55, %v3550_v54  ;;  %v2878_v47 = vld [vmem:[#allocation2 + $0x10] sm:$0xf]  ;;  %v4314_v55 = vld [vmem:[#allocation2 + $0x324] sm:$0xf0] }
  0xd6   :  { %2145 = vmatpush.bf16.msrb.mxu1 %v3451_v5  ;;  %v1927_v58 = vadd.f32 %v1926_v56, %v4809_v3  ;;  %v1939_v59 = vpop.f32.mrf.mxu1  ;;  %v4332_v5 = vld [vmem:[#allocation2 + $0x3b4] sm:$0xf0]  ;;  %v2951_v3 = vor.u32 %v4236_v63, %v2950_v62  ;;  %v3070_v51 = vld [vmem:[#allocation2 + $0x190] sm:$0xf]  ;;  %v2879_v63 = vor.u32 %v4218_v48, %v2878_v47  ;;  %v4482_v48 = vld [vmem:[#allocation2 + $0x864] sm:$0xf0] }
  0xd7   :  { %2158 = vmatpush.bf16.msrb.mxu2 %v3643_v6  ;;  %v3454_v56 = vld [vmem:[#allocation2 + $0x490] sm:$0xf] }
  0xd8   :  { %2171 = vmatpush.bf16.msrb.mxu3 %v3835_v11  ;;  %2133 = vmatmul.bf16.vlgmr.msrb.gmra.mxu0 %v4771_v18  ;;  %v4816_v6 = vadd.f32 %v1939_v59, %v1927_v58  ;;  %v3143_v11 = vor.u32 %v4284_v2, %v3142_v0  ;;  %v3814_v59 = vld [vmem:[#allocation2 + $0x760] sm:$0xf]  ;;  %v4500_v0 = vld [vmem:[#allocation2 + $0x8f4] sm:$0xf0]  ;;  %v3048_v2 = vld [vmem:[#allocation2 + $0x178] sm:$0xf0] }
  0xd9   :  { %2177 = vmatpush.bf16.msra.mxu0 %v3047_v12  ;;  %2146 = vmatmul.bf16.vlgmr.msrb.gmra.mxu1 %v4775_v20  ;;  %v3335_v12 = vor.u32 %v4332_v5, %v3334_v4  ;;  %v3071_v4 = vor.u32 %v4266_v52, %v3070_v51  ;;  %v3263_v5 = vor.u32 %v4314_v55, %v3262_v53  ;;  %v4287_v51 = vld [vmem:[#allocation2 + $0x254] sm:$0xf]  ;;  %v3168_v52 = vld [vmem:[#allocation2 + $0x268] sm:$0xf0] }
  0xda   :  { %2190 = vmatpush.bf16.msra.mxu1 %v3239_v13  ;;  %2159 = vmatmul.bf16.vlgmr.msrb.gmra.mxu2 %v4786_v35  ;;  %v2926_v13 = vld [vmem:[#allocation2 + $0x70] sm:$0xf] }
  0xdb   :  { %2203 = vmatpush.bf16.msra.mxu2 %v3431_v14  ;;  %2172 = vmatmul.bf16.vlgmr.msrb.gmra.mxu3 %v4788_v38  ;;  %v4230_v14 = vld [vmem:[#allocation2 + $0x84] sm:$0xf0] }
  0xdc   :  { %2216 = vmatpush.bf16.msra.mxu3 %v3623_v21  ;;  %v3310_v21 = vld [vmem:[#allocation2 + $0x370] sm:$0xf]  ;;  %v2927_v30 = vor.u32 %v4230_v14, %v2926_v13  ;;  %v4446_v14 = vld [vmem:[#allocation2 + $0x744] sm:$0xf0] }
  0xdd   :  { %2178 = vmatpush.bf16.msra.mxu0 %v3023_v29  ;;  %v1952_v24 = vpop.f32.mrf.mxu2  ;;  %v1928_v29 = vpop.f32.mrf.mxu0  ;;  %v3311_v33 = vor.u32 %v4326_v23, %v3310_v21  ;;  %v3790_v13 = vld [vmem:[#allocation2 + $0x730] sm:$0xf]  ;;  %v4251_v21 = vld [vmem:[#allocation2 + $0x134] sm:$0xf]  ;;  %v3024_v23 = vld [vmem:[#allocation2 + $0x148] sm:$0xf0] }
  0xde   :  { %2191 = vmatpush.bf16.msra.mxu1 %v3215_v31  ;;  %v1953_v27 = vadd.f32 %v1952_v24, %v393_v10  ;;  %v1965_v28 = vpop.f32.mrf.mxu3  ;;  %v1941_v31 = vpop.f32.mrf.mxu1  ;;  %v4299_v24 = vld [vmem:[#allocation2 + $0x2b4] sm:$0xf]  ;;  %v3791_v26 = vor.u32 %v4446_v14, %v3790_v13  ;;  %v3766_v29 = vld [vmem:[#allocation2 + $0x700] sm:$0xf]  ;;  %v4470_v14 = vld [vmem:[#allocation2 + $0x804] sm:$0xf0] }
  0xdf   :  { %2204 = vmatpush.bf16.msra.mxu2 %v3407_v32  ;;  %v3119_v32 = vor.u32 %v4278_v17, %v3118_v15  ;;  %v3982_v15 = vld [vmem:[#allocation2 + $0x8b0] sm:$0xf]  ;;  %v4494_v17 = vld [vmem:[#allocation2 + $0x8c4] sm:$0xf0]  ;;  %v3958_v31 = vld [vmem:[#allocation2 + $0x880] sm:$0xf] }
  0xe0   :  { %2217 = vmatpush.bf16.msra.mxu3 %v3599_v37  ;;  %v3094_v37 = vld [vmem:[#allocation2 + $0x1c0] sm:$0xf]  ;;  %v4819_v39 = vadd.f32 %v1965_v28, %v1953_v27  ;;  %v3983_v27 = vor.u32 %v4494_v17, %v3982_v15  ;;  %v3027_v28 = vor.u32 %v4251_v21, %v3024_v23  ;;  %v4227_v15 = vld [vmem:[#allocation2 + $0x74] sm:$0xf] }
  0xe1   :  { %2179 = vmatpush.bf16.msra.mxu0 %v2999_v44  ;;  %v3478_v44 = vld [vmem:[#allocation2 + $0x4c0] sm:$0xf]  ;;  %v3095_v49 = vor.u32 %v4272_v41, %v3094_v37  ;;  %v4293_v37 = vld [vmem:[#allocation2 + $0x284] sm:$0xf]  ;;  %v4275_v23 = vld [vmem:[#allocation2 + $0x1f4] sm:$0xf] }
  0xe2   :  { %2192 = vmatpush.bf16.msra.mxu1 %v3191_v45  ;;  %v4368_v45 = vld [vmem:[#allocation2 + $0x4d4] sm:$0xf0] }
  0xe3   :  { %2205 = vmatpush.bf16.msra.mxu2 %v3383_v46  ;;  %v2903_v46 = vor.u32 %v4224_v36, %v2902_v34  ;;  %v3479_v54 = vor.u32 %v4368_v45, %v3478_v44  ;;  %v4245_v34 = vld [vmem:[#allocation2 + $0x104] sm:$0xf]  ;;  %v3000_v36 = vld [vmem:[#allocation2 + $0x118] sm:$0xf0]  ;;  %v3742_v44 = vld [vmem:[#allocation2 + $0x6d0] sm:$0xf] }
  0xe4   :  { %2218 = vmatpush.bf16.msra.mxu3 %v3575_v50  ;;  %v3287_v50 = vor.u32 %v4320_v43, %v3286_v42  ;;  %v3003_v43 = vor.u32 %v4245_v34, %v3000_v36  ;;  %v4434_v45 = vld [vmem:[#allocation2 + $0x6e4] sm:$0xf0]  ;;  %v4464_v36 = vld [vmem:[#allocation2 + $0x7d4] sm:$0xf0] }
  0xe5   :  { %2180 = vmatpush.bf16.msra.mxu0 %v2975_v57  ;;  %v4362_v57 = vld [vmem:[#allocation2 + $0x4a4] sm:$0xf0]  ;;  %v1954_v58 = vpop.f32.mrf.mxu2  ;;  %v3743_v53 = vor.u32 %v4434_v45, %v3742_v44  ;;  %v3646_v44 = vld [vmem:[#allocation2 + $0x610] sm:$0xf] }
  0xe6   :  { %2193 = vmatpush.bf16.msra.mxu1 %v3167_v60  ;;  %v4452_v60 = vld [vmem:[#allocation2 + $0x774] sm:$0xf0]  ;;  %v1967_v62 = vpop.f32.mrf.mxu3  ;;  %v3455_v10 = vor.u32 %v4362_v57, %v3454_v56  ;;  %v3718_v57 = vld [vmem:[#allocation2 + $0x6a0] sm:$0xf]  ;;  %v4410_v45 = vld [vmem:[#allocation2 + $0x624] sm:$0xf0] }
  0xe7   :  { %2206 = vmatpush.bf16.msra.mxu2 %v3359_v61  ;;  %v4006_v61 = vld [vmem:[#allocation2 + $0x8e0] sm:$0xf]  ;;  %v4428_v58 = vld [vmem:[#allocation2 + $0x6b4] sm:$0xf0]  ;;  %v3171_v62 = vor.u32 %v4287_v51, %v3168_v52 }
  0xe8   :  { %2219 = vmatpush.bf16.msra.mxu3 %v3551_v1  ;;  %v4257_v1 = vld [vmem:[#allocation2 + $0x164] sm:$0xf] }
  0xe9   :  { %2181 = vmatpush.bf16.msra.mxu0 %v2951_v3  ;;  %v3815_v3 = vor.u32 %v4452_v60, %v3814_v59  ;;  %v3910_v59 = vld [vmem:[#allocation2 + $0x820] sm:$0xf] }
  0xea   :  { %2194 = vmatpush.bf16.msra.mxu1 %v3143_v11  ;;  %v4007_v11 = vor.u32 %v4500_v0, %v4006_v61  ;;  %v4233_v0 = vld [vmem:[#allocation2 + $0xa4] sm:$0xf] }
  0xeb   :  { %2207 = vmatpush.bf16.msra.mxu2 %v3335_v12  ;;  %v3051_v12 = vor.u32 %v4257_v1, %v3048_v2  ;;  %v2952_v1 = vld [vmem:[#allocation2 + $0xb8] sm:$0xf0]  ;;  %v4281_v2 = vld [vmem:[#allocation2 + $0x224] sm:$0xf] }
  0xec   :  { %2220 = vmatpush.bf16.msra.mxu3 %v3527_v16  ;;  %v3243_v16 = vor.u32 %v4305_v8, %v3240_v9  ;;  %v3719_v8 = vor.u32 %v4428_v58, %v3718_v57  ;;  %v4353_v57 = vld [vmem:[#allocation2 + $0x464] sm:$0xf]  ;;  %v3432_v58 = vld [vmem:[#allocation2 + $0x478] sm:$0xf0] }
  0xed   :  { %2182 = vmatpush.bf16.msra.mxu0 %v2927_v30  ;;  %v4440_v30 = vld [vmem:[#allocation2 + $0x714] sm:$0xf0] }
  0xee   :  { %2195 = vmatpush.bf16.msra.mxu1 %v3119_v32  ;;  %v3219_v32 = vor.u32 %v4299_v24, %v3216_v25  ;;  %v3767_v41 = vor.u32 %v4440_v30, %v3766_v29  ;;  %v3120_v24 = vld [vmem:[#allocation2 + $0x208] sm:$0xf0]  ;;  %v3670_v30 = vld [vmem:[#allocation2 + $0x640] sm:$0xf] }
  0xef   :  { %2208 = vmatpush.bf16.msra.mxu2 %v3311_v33  ;;  %v4488_v33 = vld [vmem:[#allocation2 + $0x894] sm:$0xf0]  ;;  %v3123_v34 = vor.u32 %v4275_v23, %v3120_v24 }
  0xf0   :  { %2221 = vmatpush.bf16.msra.mxu3 %v3503_v40  ;;  %v3192_v40 = vld [vmem:[#allocation2 + $0x298] sm:$0xf0]  ;;  %v3959_v42 = vor.u32 %v4488_v33, %v3958_v31  ;;  %v4416_v31 = vld [vmem:[#allocation2 + $0x654] sm:$0xf0] }
  0xf1   :  { %2183 = vmatpush.bf16.msra.mxu0 %v2903_v46  ;;  %v3934_v46 = vld [vmem:[#allocation2 + $0x850] sm:$0xf]  ;;  %v3195_v47 = vor.u32 %v4293_v37, %v3192_v40  ;;  %v4221_v37 = vld [vmem:[#allocation2 + $0x44] sm:$0xf]  ;;  %v2904_v40 = vld [vmem:[#allocation2 + $0x58] sm:$0xf0] }
  0xf2   :  { %2196 = vmatpush.bf16.msra.mxu1 %v3095_v49  ;;  %v4239_v49 = vld [vmem:[#allocation2 + $0xd4] sm:$0xf]  ;;  %v3935_v55 = vor.u32 %v4482_v48, %v3934_v46  ;;  %v3838_v48 = vld [vmem:[#allocation2 + $0x790] sm:$0xf] }
  0xf3   :  { %2209 = vmatpush.bf16.msra.mxu2 %v3287_v50  ;;  %v2976_v50 = vld [vmem:[#allocation2 + $0xe8] sm:$0xf0] }
  0xf4   :  { %2222 = vmatpush.bf16.msra.mxu3 %v3479_v54  ;;  %v2979_v56 = vor.u32 %v4239_v49, %v2976_v50  ;;  %v4458_v49 = vld [vmem:[#allocation2 + $0x7a4] sm:$0xf0]  ;;  %v4215_v50 = vld [vmem:[#allocation2 + $0x14] sm:$0xf] }
  0xf5   :  { %2184 = vmatpush.bf16.msra.mxu0 %v2879_v63  ;;  %v1978_v54 = vpop.f32.mrf.mxu0  ;;  %v4476_v63 = vld [vmem:[#allocation2 + $0x834] sm:$0xf0] }
  0xf6   :  { %2197 = vmatpush.bf16.msra.mxu1 %v3071_v4  ;;  %v1979_v60 = vadd.f32 %v1978_v54, %v4819_v39  ;;  %v1991_v61 = vpop.f32.mrf.mxu1  ;;  %v3144_v4 = vld [vmem:[#allocation2 + $0x238] sm:$0xf0]  ;;  %v3911_v9 = vor.u32 %v4476_v63, %v3910_v59  ;;  %v4263_v54 = vld [vmem:[#allocation2 + $0x194] sm:$0xf]  ;;  %v4401_v59 = vld [vmem:[#allocation2 + $0x5e4] sm:$0xf] }
  0xf7   :  { %2210 = vmatpush.bf16.msra.mxu2 %v3263_v5  ;;  %v3147_v39 = vor.u32 %v4281_v2, %v3144_v4  ;;  %v3816_v63 = vld [vmem:[#allocation2 + $0x778] sm:$0xf0]  ;;  %v4497_v2 = vld [vmem:[#allocation2 + $0x8e4] sm:$0xf] }
  0xf8   :  { %2223 = vmatpush.bf16.msra.mxu3 %v3455_v10  ;;  %2185 = vmatmul.bf16.vlgmr.msra.gmra.mxu0 %v4773_v19  ;;  %v1992_v5 = vadd.f32 %v1991_v61, %v1979_v60  ;;  %v2955_v10 = vor.u32 %v4233_v0, %v2952_v1  ;;  %v3647_v60 = vor.u32 %v4410_v45, %v3646_v44  ;;  %v3624_v61 = vld [vmem:[#allocation2 + $0x5f8] sm:$0xf0]  ;;  %v3552_v45 = vld [vmem:[#allocation2 + $0x568] sm:$0xf0] }
  0xf9   :  { %2229 = vmatpush.bf16.msrb.mxu0 %v3815_v3  ;;  %2198 = vmatmul.bf16.vlgmr.msra.gmra.mxu1 %v4777_v22  ;;  %v3694_v3 = vld [vmem:[#allocation2 + $0x670] sm:$0xf]  ;;  %v3839_v0 = vor.u32 %v4458_v49, %v3838_v48  ;;  %v4008_v4 = vld [vmem:[#allocation2 + $0x8f8] sm:$0xf0]  ;;  %v4479_v48 = vld [vmem:[#allocation2 + $0x854] sm:$0xf] }
  0xfa   :  { %2242 = vmatpush.bf16.msrb.mxu1 %v4007_v11  ;;  %2211 = vmatmul.bf16.vlgmr.msra.gmra.mxu2 %v4771_v18  ;;  %v4422_v11 = vld [vmem:[#allocation2 + $0x684] sm:$0xf0] }
  0xfb   :  { %2255 = vmatpush.bf16.msrb.mxu2 %v3051_v12  ;;  %2224 = vmatmul.bf16.vlgmr.msra.gmra.mxu3 %v4775_v20  ;;  %v3886_v12 = vld [vmem:[#allocation2 + $0x7f0] sm:$0xf]  ;;  %v3695_v25 = vor.u32 %v4422_v11, %v3694_v3  ;;  %v4347_v3 = vld [vmem:[#allocation2 + $0x434] sm:$0xf]  ;;  %v3408_v11 = vld [vmem:[#allocation2 + $0x448] sm:$0xf0] }
  0xfc   :  { %2268 = vmatpush.bf16.msrb.mxu3 %v3243_v16  ;;  %v2928_v16 = vld [vmem:[#allocation2 + $0x88] sm:$0xf0] }
  0xfd   :  { %2230 = vmatpush.bf16.msrb.mxu0 %v3791_v26  ;;  %v2004_v13 = vpop.f32.mrf.mxu2  ;;  %v2931_v29 = vor.u32 %v4227_v15, %v2928_v16  ;;  %v3792_v15 = vld [vmem:[#allocation2 + $0x748] sm:$0xf0]  ;;  %v4491_v16 = vld [vmem:[#allocation2 + $0x8b4] sm:$0xf] }
  0xfe   :  { %2243 = vmatpush.bf16.msrb.mxu1 %v3983_v27  ;;  %v2005_v17 = vadd.f32 %v2004_v13, %v1992_v5  ;;  %v2017_v21 = vpop.f32.mrf.mxu3  ;;  %v1980_v27 = vpop.f32.mrf.mxu0  ;;  %v4011_v13 = vor.u32 %v4497_v2, %v4008_v4  ;;  %v3312_v2 = vld [vmem:[#allocation2 + $0x388] sm:$0xf0]  ;;  %v4371_v4 = vld [vmem:[#allocation2 + $0x4f4] sm:$0xf] }
  0xff   :  { %2256 = vmatpush.bf16.msrb.mxu2 %v3027_v28  ;;  %v3887_v28 = vor.u32 %v4470_v14, %v3886_v12  ;;  %v1993_v33 = vpop.f32.mrf.mxu1  ;;  %v4395_v12 = vld [vmem:[#allocation2 + $0x5b4] sm:$0xf]  ;;  %v3384_v27 = vld [vmem:[#allocation2 + $0x418] sm:$0xf0] }
 0x100   :  { %2269 = vmatpush.bf16.msrb.mxu3 %v3219_v32  ;;  %v4826_v26 = vadd.f32 %v2017_v21, %v2005_v17  ;;  %v3862_v32 = vld [vmem:[#allocation2 + $0x7c0] sm:$0xf]  ;;  %v4443_v14 = vld [vmem:[#allocation2 + $0x734] sm:$0xf]  ;;  %v3984_v17 = vld [vmem:[#allocation2 + $0x8c8] sm:$0xf0]  ;;  %v3411_v21 = vor.u32 %v4347_v3, %v3408_v11 }
 0x101   :  { %2231 = vmatpush.bf16.msrb.mxu0 %v3767_v41  ;;  %v4269_v41 = vld [vmem:[#allocation2 + $0x1c4] sm:$0xf]  ;;  %v3863_v46 = vor.u32 %v4464_v36, %v3862_v32  ;;  %v3795_v24 = vor.u32 %v4443_v14, %v3792_v15  ;;  %v3768_v32 = vld [vmem:[#allocation2 + $0x718] sm:$0xf0]  ;;  %v4467_v11 = vld [vmem:[#allocation2 + $0x7f4] sm:$0xf] }
 0x102   :  { %2244 = vmatpush.bf16.msrb.mxu1 %v3959_v42  ;;  %v3096_v42 = vld [vmem:[#allocation2 + $0x1d8] sm:$0xf0]  ;;  %v4485_v33 = vld [vmem:[#allocation2 + $0x884] sm:$0xf] }
 0x103   :  { %2257 = vmatpush.bf16.msrb.mxu2 %v3003_v43  ;;  %v3671_v43 = vor.u32 %v4416_v31, %v3670_v30  ;;  %v3099_v52 = vor.u32 %v4269_v41, %v3096_v42  ;;  %v3576_v30 = vld [vmem:[#allocation2 + $0x598] sm:$0xf0]  ;;  %v4437_v31 = vld [vmem:[#allocation2 + $0x704] sm:$0xf]  ;;  %v4335_v41 = vld [vmem:[#allocation2 + $0x3d4] sm:$0xf] }
 0x104   :  { %2270 = vmatpush.bf16.msrb.mxu3 %v3195_v47  ;;  %v2907_v47 = vor.u32 %v4221_v37, %v2904_v40  ;;  %v3771_v40 = vor.u32 %v4437_v31, %v3768_v32  ;;  %v3360_v42 = vld [vmem:[#allocation2 + $0x3e8] sm:$0xf0]  ;;  %v3864_v31 = vld [vmem:[#allocation2 + $0x7d8] sm:$0xf0] }
 0x105   :  { %2232 = vmatpush.bf16.msrb.mxu0 %v3743_v53  ;;  %v2006_v51 = vpop.f32.mrf.mxu2  ;;  %v2880_v53 = vld [vmem:[#allocation2 + $0x28] sm:$0xf0] }
 0x106   :  { %2245 = vmatpush.bf16.msrb.mxu1 %v3935_v55  ;;  %v3072_v55 = vld [vmem:[#allocation2 + $0x1a8] sm:$0xf0]  ;;  %v2883_v1 = vor.u32 %v4215_v50, %v2880_v53  ;;  %v3363_v50 = vor.u32 %v4335_v41, %v3360_v42  ;;  %v4329_v53 = vld [vmem:[#allocation2 + $0x3a4] sm:$0xf]  ;;  %v394_v41 = vperm.slane %v4806_v7, 2  ;;  %v4508_v7 = vld [vmem:[%s5006_s3 + $0x38] sm:$0xff] }
 0x107   :  { %2258 = vmatpush.bf16.msrb.mxu2 %v2979_v56  ;;  %v2019_v56 = vpop.f32.mrf.mxu3  ;;  %v3075_v5 = vor.u32 %v4263_v54, %v3072_v55  ;;  %v3336_v54 = vld [vmem:[#allocation2 + $0x3b8] sm:$0xf0]  ;;  %v4377_v55 = vld [vmem:[#allocation2 + $0x524] sm:$0xf] }
 0x108   :  { %2271 = vmatpush.bf16.msrb.mxu3 %v3171_v62  ;;  %v4449_v62 = vld [vmem:[#allocation2 + $0x764] sm:$0xf] }
 0x109   :  { %2233 = vmatpush.bf16.msrb.mxu0 %v3719_v8  ;;  %v3435_v8 = vor.u32 %v4353_v57, %v3432_v58  ;;  %v3528_v57 = vld [vmem:[#allocation2 + $0x538] sm:$0xf0]  ;;  %v4425_v58 = vld [vmem:[#allocation2 + $0x6a4] sm:$0xf] }
 0x10a   :  { %2246 = vmatpush.bf16.msrb.mxu1 %v3911_v9  ;;  %v3627_v9 = vor.u32 %v4401_v59, %v3624_v61  ;;  %v3720_v59 = vld [vmem:[#allocation2 + $0x6b8] sm:$0xf0] }
 0x10b   :  { %2259 = vmatpush.bf16.msrb.mxu2 %v2955_v10  ;;  %v3819_v10 = vor.u32 %v4449_v62, %v3816_v63  ;;  %v3912_v61 = vld [vmem:[#allocation2 + $0x838] sm:$0xf0]  ;;  %v3339_v62 = vor.u32 %v4329_v53, %v3336_v54  ;;  %v3531_v63 = vor.u32 %v4377_v55, %v3528_v57 }
 0x10c   :  { %2272 = vmatpush.bf16.msrb.mxu3 %v3147_v39  ;;  %v3600_v39 = vld [vmem:[#allocation2 + $0x5c8] sm:$0xf0]  ;;  %v4516_v55 = vld [vmem:[%s5006_s3 + $0x78] sm:$0xff] }
 0x10d   :  { %2234 = vmatpush.bf16.msrb.mxu0 %v3695_v25  ;;  %v3603_v23 = vor.u32 %v4395_v12, %v3600_v39  ;;  %v4341_v25 = vld [vmem:[#allocation2 + $0x404] sm:$0xf]  ;;  %v3888_v12 = vld [vmem:[#allocation2 + $0x808] sm:$0xf0] }
 0x10e   :  { %2247 = vmatpush.bf16.msrb.mxu1 %v3887_v28  ;;  %v4389_v28 = vld [vmem:[#allocation2 + $0x584] sm:$0xf]  ;;  %v3387_v36 = vor.u32 %v4341_v25, %v3384_v27  ;;  %v3891_v25 = vor.u32 %v4467_v11, %v3888_v12  ;;  %v3480_v27 = vld [vmem:[#allocation2 + $0x4d8] sm:$0xf0] }
 0x10f   :  { %2260 = vmatpush.bf16.msrb.mxu2 %v2931_v29  ;;  %v3987_v29 = vor.u32 %v4491_v16, %v3984_v17  ;;  %v3579_v37 = vor.u32 %v4389_v28, %v3576_v30  ;;  %v4413_v28 = vld [vmem:[#allocation2 + $0x644] sm:$0xf] }
 0x110   :  { %2273 = vmatpush.bf16.msrb.mxu3 %v3123_v34  ;;  %v3960_v34 = vld [vmem:[#allocation2 + $0x898] sm:$0xf0]  ;;  %v4461_v30 = vld [vmem:[#allocation2 + $0x7c4] sm:$0xf] }
 0x111   :  { %2235 = vmatpush.bf16.msrb.mxu0 %v3671_v43  ;;  %v4383_v43 = vld [vmem:[#allocation2 + $0x554] sm:$0xf]  ;;  %v3963_v44 = vor.u32 %v4485_v33, %v3960_v34  ;;  %v3867_v42 = vor.u32 %v4461_v30, %v3864_v31  ;;  %v4509_v31 = vld [vmem:[%s5006_s3 + $0x40] sm:$0xff] }
 0x112   :  { %2248 = vmatpush.bf16.msrb.mxu1 %v3863_v46  ;;  %v4431_v46 = vld [vmem:[#allocation2 + $0x6d4] sm:$0xf] }
 0x113   :  { %2261 = vmatpush.bf16.msrb.mxu2 %v2907_v47  ;;  %v3744_v47 = vld [vmem:[#allocation2 + $0x6e8] sm:$0xf0]  ;;  %v4311_v33 = vld [vmem:[#allocation2 + $0x314] sm:$0xf] }
 0x114   :  { %2274 = vmatpush.bf16.msrb.mxu3 %v3099_v52  ;;  %v3747_v52 = vor.u32 %v4431_v46, %v3744_v47  ;;  %v4455_v47 = vld [vmem:[#allocation2 + $0x794] sm:$0xf] }
 0x115   :  { %2236 = vmatpush.bf16.msrb.mxu0 %v3647_v60  ;;  %v4832_v49 = vpop.f32.mrf.mxu0  ;;  %v4473_v60 = vld [vmem:[#allocation2 + $0x824] sm:$0xf] }
 0x116   :  { %2249 = vmatpush.bf16.msrb.mxu1 %v3839_v0  ;;  %v4834_v51 = vpop.f32.mrf.mxu1  ;;  %v3723_v0 = vor.u32 %v4425_v58, %v3720_v59  ;;  %v2031_v53 = vadd.f32 %v4832_v49, %v394_v41  ;;  %v4507_v49 = vld [vmem:[%s5006_s3 + $0x30] sm:$0xff]  ;;  %v4532_v58 = vld [vmem:[%s5006_s3 + $0xf8] sm:$0xff] }
 0x117   :  { %2262 = vmatpush.bf16.msrb.mxu2 %v2883_v1  ;;  %v4323_v1 = vld [vmem:[#allocation2 + $0x374] sm:$0xf] }
 0x118   :  { %2275 = vmatpush.bf16.msrb.mxu3 %v3075_v5  ;;  %2237 = vmatmul.bf16.vlgmr.msrb.gmra.mxu0 %v4786_v35  ;;  %v3915_v5 = vor.u32 %v4473_v60, %v3912_v61  ;;  %v3315_v14 = vor.u32 %v4323_v1, %v3312_v2  ;;  %v2044_v57 = vadd.f32 %v4834_v51, %v2031_v53  ;;  %v4515_v59 = vld [vmem:[%s5006_s3 + $0x70] sm:$0xff]  ;;  %v4506_v61 = vld [vmem:[%s5006_s3 + $0x28] sm:$0xff]  ;;  %v4513_v2 = vld [vmem:[%s5006_s3 + $0x60] sm:$0xff] }
 0x119   :  { %2281 = vmatpush.bf16.msra.mxu0 %v3435_v8  ;;  %2250 = vmatmul.bf16.vlgmr.msrb.gmra.mxu1 %v4788_v38  ;;  %v3504_v8 = vld [vmem:[#allocation2 + $0x508] sm:$0xf0]  ;;  %v4523_v51 = vld [vmem:[%s5006_s3 + $0xb0] sm:$0xff] }
 0x11a   :  { %2294 = vmatpush.bf16.msra.mxu1 %v3627_v9  ;;  %2263 = vmatmul.bf16.vlgmr.msrb.gmra.mxu2 %v4773_v19  ;;  %v3936_v19 = vld [vmem:[#allocation2 + $0x868] sm:$0xf0]  ;;  %v4419_v9 = vld [vmem:[#allocation2 + $0x674] sm:$0xf]  ;;  %v3507_v16 = vor.u32 %v4371_v4, %v3504_v8  ;;  %v4521_v4 = vld [vmem:[%s5006_s3 + $0xa0] sm:$0xff] }
 0x11b   :  { %2307 = vmatpush.bf16.msra.mxu2 %v3819_v10  ;;  %2276 = vmatmul.bf16.vlgmr.msrb.gmra.mxu3 %v4777_v22  ;;  %v3555_v22 = vor.u32 %v4383_v43, %v3552_v45  ;;  %v3939_v56 = vor.u32 %v4479_v48, %v3936_v19  ;;  %v3696_v10 = vld [vmem:[#allocation2 + $0x688] sm:$0xf0]  ;;  %v4504_v8 = vld [vmem:[%s5006_s3 + $0x18] sm:$0xff] }
 0x11c   :  { %2320 = vmatpush.bf16.msra.mxu3 %v4011_v13  ;;  %v3699_v17 = vor.u32 %v4419_v9, %v3696_v10  ;;  %v3456_v43 = vld [vmem:[#allocation2 + $0x4a8] sm:$0xf0]  ;;  %v4529_v9 = vld [vmem:[%s5006_s3 + $0xe0] sm:$0xff]  ;;  %v4512_v10 = vld [vmem:[%s5006_s3 + $0x58] sm:$0xff] }
 0x11d   :  { %2282 = vmatpush.bf16.msra.mxu0 %v3411_v21  ;;  %v4836_v3 = vpop.f32.mrf.mxu2  ;;  %v2032_v13 = vpop.f32.mrf.mxu0  ;;  %v4317_v21 = vld [vmem:[#allocation2 + $0x344] sm:$0xf]  ;;  %v3648_v45 = vld [vmem:[#allocation2 + $0x628] sm:$0xf0] }
 0x11e   :  { %2295 = vmatpush.bf16.msra.mxu1 %v3603_v23  ;;  %v4838_v39 = vpop.f32.mrf.mxu3  ;;  %v2045_v15 = vpop.f32.mrf.mxu1  ;;  %v3288_v23 = vld [vmem:[#allocation2 + $0x358] sm:$0xf0]  ;;  %v3840_v48 = vld [vmem:[#allocation2 + $0x7a8] sm:$0xf0]  ;;  %v2057_v60 = vadd.f32 %v4836_v3, %v2044_v57 }
 0x11f   :  { %2308 = vmatpush.bf16.msra.mxu2 %v3795_v24  ;;  %v4365_v24 = vld [vmem:[#allocation2 + $0x4c4] sm:$0xf]  ;;  %v3291_v32 = vor.u32 %v4317_v21, %v3288_v23  ;;  %v3843_v54 = vor.u32 %v4455_v47, %v3840_v48  ;;  %v4530_v1 = vld [vmem:[%s5006_s3 + $0xe8] sm:$0xff]  ;;  %v4520_v3 = vld [vmem:[%s5006_s3 + $0x98] sm:$0xff] }
 0x120   :  { %2321 = vmatpush.bf16.msra.mxu3 %v3987_v29  ;;  %v3672_v29 = vld [vmem:[#allocation2 + $0x658] sm:$0xf0]  ;;  %v3483_v34 = vor.u32 %v4365_v24, %v3480_v27  ;;  %v4519_v21 = vld [vmem:[%s5006_s3 + $0x90] sm:$0xff]  ;;  %v4502_v23 = vld [vmem:[%s5006_s3 + $0x8] sm:$0xff] }
 0x121   :  { %2283 = vmatpush.bf16.msra.mxu0 %v3387_v36  ;;  %v3675_v36 = vor.u32 %v4413_v28, %v3672_v29  ;;  %v4527_v24 = vld [vmem:[%s5006_s3 + $0xd0] sm:$0xff]  ;;  %v4501_v29 = vld [vmem:[%s5006_s3] sm:$0xff] }
 0x122   :  { %2296 = vmatpush.bf16.msra.mxu1 %v3579_v37  ;;  %v3264_v37 = vld [vmem:[#allocation2 + $0x328] sm:$0xf0]  ;;  %v4539_v48 = vld [vmem:[%s5006_s3 + $0x130] sm:$0xff] }
 0x123   :  { %2309 = vmatpush.bf16.msra.mxu2 %v3771_v40  ;;  %v4359_v40 = vld [vmem:[#allocation2 + $0x494] sm:$0xf] }
 0x124   :  { %2322 = vmatpush.bf16.msra.mxu3 %v3963_v44  ;;  %v4407_v44 = vld [vmem:[#allocation2 + $0x614] sm:$0xf] }
 0x125   :  { %2284 = vmatpush.bf16.msra.mxu0 %v3363_v50  ;;  %v2058_v46 = vpop.f32.mrf.mxu2  ;;  %v3267_v50 = vor.u32 %v4311_v33, %v3264_v37  ;;  %v4947_v37 = vld [vmem:[#allocation4] sm:$0x3f] }
 0x126   :  { %2297 = vmatpush.bf16.msra.mxu1 %v3555_v22  ;;  %v2071_v19 = vpop.f32.mrf.mxu3  ;;  %v3459_v22 = vor.u32 %v4359_v40, %v3456_v43  ;;  %v395_v40 = vperm.slane %v4947_v37, 3  ;;  %v4525_v43 = vld [vmem:[%s5006_s3 + $0xc0] sm:$0xff] }
 0x127   :  { %2310 = vmatpush.bf16.msra.mxu2 %v3747_v52  ;;  %v3651_v52 = vor.u32 %v4407_v44, %v3648_v45 }
 0x128   :  { %2323 = vmatpush.bf16.msra.mxu3 %v3939_v56  ;;  %v4524_v56 = vld [vmem:[%s5006_s3 + $0xb8] sm:$0xff] }
 0x129   :  { %2285 = vmatpush.bf16.msra.mxu0 %v3339_v62  ;;  %v4531_v62 = vld [vmem:[%s5006_s3 + $0xf0] sm:$0xff] }
 0x12a   :  { %2298 = vmatpush.bf16.msra.mxu1 %v3531_v63  ;;  %v4505_v63 = vld [vmem:[%s5006_s3 + $0x20] sm:$0xff] }
 0x12b   :  { %2311 = vmatpush.bf16.msra.mxu2 %v3723_v0 }
 0x12c   :  { %2324 = vmatpush.bf16.msra.mxu3 %v3915_v5 }
 0x12d   :  { %2286 = vmatpush.bf16.msra.mxu0 %v3315_v14  ;;  %v4503_v14 = vld [vmem:[%s5006_s3 + $0x10] sm:$0xff] }
 0x12e   :  { %2299 = vmatpush.bf16.msra.mxu1 %v3507_v16  ;;  %v4528_v16 = vld [vmem:[%s5006_s3 + $0xd8] sm:$0xff] }
 0x12f   :  { %2312 = vmatpush.bf16.msra.mxu2 %v3699_v17  ;;  %v4511_v17 = vld [vmem:[%s5006_s3 + $0x50] sm:$0xff] }
 0x130   :  { %2325 = vmatpush.bf16.msra.mxu3 %v3891_v25  ;;  %v4510_v25 = vld [vmem:[%s5006_s3 + $0x48] sm:$0xff] }
 0x131   :  { %2287 = vmatpush.bf16.msra.mxu0 %v3291_v32  ;;  %v4517_v32 = vld [vmem:[%s5006_s3 + $0x80] sm:$0xff] }
 0x132   :  { %2300 = vmatpush.bf16.msra.mxu1 %v3483_v34  ;;  %v4540_v34 = vld [vmem:[%s5006_s3 + $0x138] sm:$0xff] }
 0x133   :  { %2313 = vmatpush.bf16.msra.mxu2 %v3675_v36 }
 0x134   :  { %2326 = vmatpush.bf16.msra.mxu3 %v3867_v42 }
 0x135   :  { %2288 = vmatpush.bf16.msra.mxu0 %v3267_v50 }
 0x136   :  { %2301 = vmatpush.bf16.msra.mxu1 %v3459_v22  ;;  %v2095_v0 = vpop.f32.mrf.mxu1  ;;  %v4538_v22 = vld [vmem:[%s5006_s3 + $0x128] sm:$0xff] }
 0x137   :  { %2314 = vmatpush.bf16.msra.mxu2 %v3651_v52 }
 0x138   :  { %2327 = vmatpush.bf16.msra.mxu3 %v3843_v54  ;;  %2289 = vmatmul.bf16.vlgmr.msra.gmra.mxu0 %v4771_v18  ;;  %v4514_v18 = vld [vmem:[%s5006_s3 + $0x68] sm:$0xff] }
 0x139   :  { %2733 = vmatpush.bf16.msrb.mxu0 %v4508_v7  ;;  %2302 = vmatmul.bf16.vlgmr.msra.gmra.mxu1 %v4775_v20  ;;  %v4522_v20 = vld [vmem:[%s5006_s3 + $0xa8] sm:$0xff] }
 0x13a   :  { %2746 = vmatpush.bf16.msrb.mxu1 %v4516_v55  ;;  %2315 = vmatmul.bf16.vlgmr.msra.gmra.mxu2 %v4786_v35  ;;  %v2070_v35 = vadd.f32 %v4838_v39, %v2057_v60  ;;  %v4537_v55 = vld [vmem:[%s5006_s3 + $0x120] sm:$0xff] }
 0x13b   :  { %2759 = vmatpush.bf16.msrb.mxu2 %v4524_v56  ;;  %2328 = vmatmul.bf16.vlgmr.msra.gmra.mxu3 %v4788_v38  ;;  %v2082_v38 = vpop.f32.mrf.mxu0 }
 0x13c   :  { %2772 = vmatpush.bf16.msrb.mxu3 %v4532_v58  ;;  %v2083_v5 = vadd.f32 %v2082_v38, %v2070_v35  ;;  %v4536_v58 = vld [vmem:[%s5006_s3 + $0x118] sm:$0xff]  ;;  %v4534_v35 = vld [vmem:[%s5006_s3 + $0x108] sm:$0xff] }
 0x13d   :  { %2734 = vmatpush.bf16.msrb.mxu0 %v4507_v49  ;;  %v2108_v11 = vpop.f32.mrf.mxu2 }
 0x13e   :  { %2747 = vmatpush.bf16.msrb.mxu1 %v4515_v59  ;;  %v2096_v12 = vadd.f32 %v2095_v0, %v2083_v5  ;;  %v2121_v13 = vpop.f32.mrf.mxu3  ;;  %v2097_v15 = vpop.f32.mrf.mxu1  ;;  %v2109_v45 = vadd.f32 %v2108_v11, %v395_v40  ;;  %v4548_v5 = vld [vmem:[%s5006_s3 + $0x178] sm:$0xff]  ;;  %v4546_v11 = vld [vmem:[%s5006_s3 + $0x168] sm:$0xff] }
 0x13f   :  { %2760 = vmatpush.bf16.msrb.mxu2 %v4523_v51 }
 0x140   :  { %2773 = vmatpush.bf16.msrb.mxu3 %v4531_v62  ;;  %4562 = vtanh.f32 %v2096_v12  ;;  %v2122_v46 = vadd.f32 %v2121_v13, %v2109_v45 }
 0x141   :  { %2735 = vmatpush.bf16.msrb.mxu0 %v4506_v61  ;;  %4564 = vtanh.f32 %v4816_v6  ;;  %v4518_v6 = vld [vmem:[%s5006_s3 + $0x88] sm:$0xff] }
 0x142   :  { %2748 = vmatpush.bf16.msrb.mxu1 %v4514_v18  ;;  %4566 = vtanh.f32 %v4826_v26  ;;  %v4526_v26 = vld [vmem:[%s5006_s3 + $0xc8] sm:$0xff] }
 0x143   :  { %2761 = vmatpush.bf16.msrb.mxu2 %v4522_v20  ;;  %v2084_v39 = vpop.f32.mrf.mxu0  ;;  %v4535_v20 = vld [vmem:[%s5006_s3 + $0x110] sm:$0xff] }
 0x144   :  { %2774 = vmatpush.bf16.msrb.mxu3 %v4530_v1 }
 0x145   :  { %2736 = vmatpush.bf16.msrb.mxu0 %v4505_v63  ;;  %v2110_v27 = vpop.f32.mrf.mxu2 }
 0x146   :  { %2749 = vmatpush.bf16.msrb.mxu1 %v4513_v2  ;;  %v2123_v28 = vpop.f32.mrf.mxu3  ;;  %v4563_v30 = vpop.eup %4562  ;;  %v4533_v2 = vld [vmem:[%s5006_s3 + $0x100] sm:$0xff] }
 0x147   :  { %2762 = vmatpush.bf16.msrb.mxu2 %v4521_v4  ;;  %v4565_v33 = vpop.eup %4564  ;;  %v2341_v41 = vpack.c.bf16 %v4563_v30, %v4563_v30  ;;  %v396_v4 = vperm.slane %v4947_v37, 4 }
 0x148   :  { %2775 = vmatpush.bf16.msrb.mxu3 %v4529_v9  ;;  %v4567_v36 = vpop.eup %4566  ;;  %v2339_v42 = vpack.c.bf16 %v4565_v33, %v4565_v33 }
 0x149   :  { %2737 = vmatpush.bf16.msrb.mxu0 %v4504_v8  ;;  %v2340_v44 = vpack.c.bf16 %v4567_v36, %v4567_v36  ;;  %v4547_v8 = vld [vmem:[%s5006_s3 + $0x170] sm:$0xff] }
 0x14a   :  { %2750 = vmatpush.bf16.msrb.mxu1 %v4512_v10 }
 0x14b   :  { %2763 = vmatpush.bf16.msrb.mxu2 %v4520_v3 }
 0x14c   :  { %2776 = vmatpush.bf16.msrb.mxu3 %v4528_v16 }
 0x14d   :  { %2738 = vmatpush.bf16.msrb.mxu0 %v4503_v14  ;;  %v4545_v14 = vld [vmem:[%s5006_s3 + $0x160] sm:$0xff] }
 0x14e   :  { %2751 = vmatpush.bf16.msrb.mxu1 %v4511_v17 }
 0x14f   :  { %2764 = vmatpush.bf16.msrb.mxu2 %v4519_v21  ;;  %v4544_v21 = vld [vmem:[%s5006_s3 + $0x158] sm:$0xff] }
 0x150   :  { %2777 = vmatpush.bf16.msrb.mxu3 %v4527_v24  ;;  %v4543_v24 = vld [vmem:[%s5006_s3 + $0x150] sm:$0xff] }
 0x151   :  { %2739 = vmatpush.bf16.msrb.mxu0 %v4502_v23 }
 0x152   :  { %2752 = vmatpush.bf16.msrb.mxu1 %v4510_v25 }
 0x153   :  { %2765 = vmatpush.bf16.msrb.mxu2 %v4518_v6 }
 0x154   :  { %2778 = vmatpush.bf16.msrb.mxu3 %v4526_v26 }
 0x155   :  { %2740 = vmatpush.bf16.msrb.mxu0 %v4501_v29  ;;  %v2134_v47 = vpop.f32.mrf.mxu0  ;;  %v4542_v29 = vld [vmem:[%s5006_s3 + $0x148] sm:$0xff] }
 0x156   :  { %2753 = vmatpush.bf16.msrb.mxu1 %v4509_v31  ;;  %v2135_v19 = vadd.f32 %v2134_v47, %v2122_v46  ;;  %v2147_v50 = vpop.f32.mrf.mxu1  ;;  %v4541_v31 = vld [vmem:[%s5006_s3 + $0x140] sm:$0xff] }
 0x157   :  { %2766 = vmatpush.bf16.msrb.mxu2 %v4517_v32 }
 0x158   :  { %2741 = vmatmul.bf16.vlgmr.msrb.gmra.mxu0 %v2339_v42  ;;  %2779 = vmatpush.bf16.msrb.mxu3 %v4525_v43  ;;  %v2148_v52 = vadd.f32 %v2147_v50, %v2135_v19 }
 0x159   :  { %2785 = vmatpush.bf16.msra.mxu0 %v4540_v34  ;;  %2754 = vmatmul.bf16.vlgmr.msrb.gmra.mxu1 %v2340_v44  ;;  %v397_v34 = vperm.slane %v4947_v37, 5 }
 0x15a   :  { %2767 = vmatmul.bf16.vlgmr.msrb.gmra.mxu2 %v2341_v41  ;;  %2798 = vmatpush.bf16.msra.mxu1 %v4548_v5 }
 0x15d   :  { %2786 = vmatpush.bf16.msra.mxu0 %v4539_v48  ;;  %v2160_v53 = vpop.f32.mrf.mxu2  ;;  %v2136_v57 = vpop.f32.mrf.mxu0 }
 0x15e   :  { %v2161_v54 = vadd.f32 %v2160_v53, %v2148_v52  ;;  %v2173_v7 = vpop.f32.mrf.mxu3  ;;  %v2149_v49 = vpop.f32.mrf.mxu1  ;;  %2799 = vmatpush.bf16.msra.mxu1 %v4547_v8 }
 0x160   :  { %v2174_v56 = vadd.f32 %v2173_v7, %v2161_v54  ;;  %v4560_v7 = vld [vmem:[#allocation6] ss:$0 sm:$0xff] }
 0x161   :  { %2787 = vmatpush.bf16.msra.mxu0 %v4538_v22 }
 0x162   :  { %4568 = vtanh.f32 %v2174_v56  ;;  %2800 = vmatpush.bf16.msra.mxu1 %v4546_v11 }
 0x165   :  { %2788 = vmatpush.bf16.msra.mxu0 %v4537_v55  ;;  %v2162_v59 = vpop.f32.mrf.mxu2 }
 0x166   :  { %v2175_v51 = vpop.f32.mrf.mxu3  ;;  %2801 = vmatpush.bf16.msra.mxu1 %v4545_v14 }
 0x168   :  { %v4569_v60 = vpop.eup %4568 }
 0x169   :  { %2789 = vmatpush.bf16.msra.mxu0 %v4536_v58  ;;  %v2342_v61 = vpack.c.bf16 %v4569_v60, %v4569_v60 }
 0x16a   :  { %2802 = vmatpush.bf16.msra.mxu1 %v4544_v21 }
 0x16b   :  { %2780 = vmatmul.bf16.vlgmr.msrb.gmra.mxu3 %v2342_v61 }
 0x16d   :  { %2790 = vmatpush.bf16.msra.mxu0 %v4535_v20  ;;  %v4550_v20 = vld [vmem:[#allocation7 + $0x8] sm:$0xff] }
 0x16e   :  { %2803 = vmatpush.bf16.msra.mxu1 %v4543_v24  ;;  %2845 = vmatpush.bf16.msra.mxu2 %v4550_v20 }
 0x171   :  { %2791 = vmatpush.bf16.msra.mxu0 %v4534_v35 }
 0x172   :  { %2804 = vmatpush.bf16.msra.mxu1 %v4542_v29 }
 0x175   :  { %v2186_v62 = vpop.f32.mrf.mxu0  ;;  %2792 = vmatpush.bf16.msra.mxu0 %v4533_v2 }
 0x176   :  { %v2199_v18 = vpop.f32.mrf.mxu1  ;;  %v2187_v9 = vadd.f32 %v2186_v62, %v396_v4  ;;  %2805 = vmatpush.bf16.msra.mxu1 %v4541_v31 }
 0x178   :  { %v2200_v12 = vadd.f32 %v2199_v18, %v2187_v9 }
 0x17d   :  { %v2212_v38 = vpop.f32.mrf.mxu2  ;;  %v2188_v63 = vpop.f32.mrf.mxu0 }
 0x17e   :  { %v2225_v0 = vpop.f32.mrf.mxu3  ;;  %v2201_v1 = vpop.f32.mrf.mxu1  ;;  %v2213_v13 = vadd.f32 %v2212_v38, %v2200_v12  ;;  %v4549_v63 = vld [vmem:[#allocation7] sm:$0xff] }
 0x17f   :  { %2846 = vmatpush.bf16.msra.mxu2 %v4549_v63 }
 0x180   :  { %v2226_v39 = vadd.f32 %v2225_v0, %v2213_v13 }
 0x185   :  { %v2214_v10 = vpop.f32.mrf.mxu2 }
 0x186   :  { %v2227_v3 = vpop.f32.mrf.mxu3  ;;  %v4561_v10 = vld [vmem:[#allocation9] ss:$0 sm:$0xff] }
 0x195   :  { %v2238_v15 = vpop.f32.mrf.mxu0 }
 0x196   :  { %v2239_v16 = vadd.f32 %v2238_v15, %v2226_v39  ;;  %v2251_v17 = vpop.f32.mrf.mxu1 }
 0x198   :  { %v2252_v23 = vadd.f32 %v2251_v17, %v2239_v16 }
 0x19a   :  { %4570 = vtanh.f32 %v2252_v23 }
 0x19d   :  { %v2264_v25 = vpop.f32.mrf.mxu2  ;;  %v2240_v27 = vpop.f32.mrf.mxu0 }
 0x19e   :  { %v2277_v6 = vpop.f32.mrf.mxu3  ;;  %v2253_v28 = vpop.f32.mrf.mxu1  ;;  %v2265_v36 = vadd.f32 %v2264_v25, %v397_v34 }
 0x1a0   :  { %v4571_v26 = vpop.eup %4570  ;;  %v2278_v40 = vadd.f32 %v2277_v6, %v2265_v36 }
 0x1a1   :  { %v2343_v30 = vpack.c.bf16 %v4571_v26, %v4571_v26 }
 0x1a3   :  { %2793 = vmatmul.bf16.vlgmr.msra.gmra.mxu0 %v2343_v30 }
 0x1a5   :  { %v2266_v32 = vpop.f32.mrf.mxu2 }
 0x1a6   :  { %v2279_v33 = vpop.f32.mrf.mxu3 }
 0x1b5   :  { %v2290_v41 = vpop.f32.mrf.mxu0 }
 0x1b6   :  { %v2303_v42 = vpop.f32.mrf.mxu1  ;;  %v2291_v43 = vadd.f32 %v2290_v41, %v2278_v40 }
 0x1b8   :  { %v2304_v44 = vadd.f32 %v2303_v42, %v2291_v43 }
 0x1bd   :  { %v2316_v45 = vpop.f32.mrf.mxu2  ;;  %v2292_v48 = vpop.f32.mrf.mxu0 }
 0x1be   :  { %v2329_v46 = vpop.f32.mrf.mxu3  ;;  %v2317_v47 = vadd.f32 %v2316_v45, %v2304_v44  ;;  %v2305_v19 = vpop.f32.mrf.mxu1 }
 0x1c0   :  { %v2330_v50 = vadd.f32 %v2329_v46, %v2317_v47 }
 0x1c2   :  { %4572 = vtanh.f32 %v2330_v50 }
 0x1c5   :  { %v2318_v22 = vpop.f32.mrf.mxu2 }
 0x1c6   :  { %v2331_v52 = vpop.f32.mrf.mxu3 }
 0x1c8   :  { %v4573_v53 = vpop.eup %4572 }
 0x1c9   :  { %v2344_v54 = vpack.c.bf16 %v4573_v53, %v4573_v53 }
 0x1cb   :  { %2806 = vmatmul.bf16.vlgmr.msra.gmra.mxu1 %v2344_v54 }
 0x1d5   :  { %v2742_v37 = vpop.f32.mrf.mxu0 }
 0x1d6   :  { %v2743_v55 = vadd.f32 %v4560_v7, %v2742_v37  ;;  %v2755_v56 = vpop.f32.mrf.mxu1 }
 0x1d8   :  { %v2756_v57 = vadd.f32 %v2755_v56, %v2743_v55 }
 0x1dd   :  { %v2768_v49 = vpop.f32.mrf.mxu2  ;;  %v2744_v59 = vpop.f32.mrf.mxu0 }
 0x1de   :  { %v2769_v58 = vadd.f32 %v2768_v49, %v2756_v57  ;;  %v2757_v51 = vpop.f32.mrf.mxu1 }
 0x1e5   :  { %v2770_v60 = vpop.f32.mrf.mxu2 }
 0x1ee   :  { %v2781_v61 = vpop.f32.mrf.mxu3 }
 0x1ef   :  { %v2782_v62 = vadd.f32 %v2781_v61, %v2769_v58 }
 0x1f6   :  { %v2783_v18 = vpop.f32.mrf.mxu3 }
 0x220   :  { %v2794_v35 = vpop.f32.mrf.mxu0 }
 0x221   :  { %v2795_v0 = vadd.f32 %v2794_v35, %v2782_v62 }
 0x228   :  { %v2796_v38 = vpop.f32.mrf.mxu0 }
 0x248   :  { %v2807_v1 = vpop.f32.mrf.mxu1 }
 0x249   :  { %v2808_v2 = vadd.f32 %v2807_v1, %v2795_v0 }
 0x24b   :  { %vm2811_vm0 = vcmp.ge.f32.partialorder %v2808_v2, 0.0  ;;  %v2812_v4 = vmul.f32 0.01, %v2808_v2 }
 0x24d   :  { %v2813_v5 = vsel %vm2811_vm0, %v2808_v2, %v2812_v4 }
 0x24e   :  { %v2814_v8 = vpack.c.bf16 %v2813_v5, %v2813_v5 }
 0x250   :  { %v2809_v9 = vpop.f32.mrf.mxu1  ;;  %4212 = vmatmul.msk.bf16.vlgmr.msra.gmra.mxu2 %vm2835_vm1, %v2814_v8 }
 0x2d3   :  { %v2848_v3 = vpop.f32.mrf.mxu2 }
 0x2d4   :  { %v2849_v11 = vadd.f32 %v4561_v10, %v2848_v3 }
 0x2d6   :  { %2852 = vst [vmem:[%s5010_s7] sm:$0xff] %v2849_v11 }
 0x2db   :  { %v2850_v12 = vpop.f32.mrf.mxu2 }
 0x2dc   :  { %2857 = vsyncpa [#allocation3], 1 }
 0x2dd   :  { %2858 = vsyncpa [#allocation5], 1 }
 0x2de   :  { %2859 = vsyncpa [#allocation8], 1 }

</bundles_post_ra>
